<compile_context>
chip_gen: v7x
topology: tpu7x:2x2x1
jax: 0.10.0
libtpu: 0.0.40
codegen_flags: <defaults>
</compile_context>

<pallas_src>
import numpy as np
import jax
import jax.numpy as jnp
from jax import lax
from jax.experimental import pallas as pl
from jax.experimental.pallas import tpu as pltpu


# Flip to jnp.bfloat16 to feed the MXU bf16 operands on v6e/v7x (accumulation stays f32 via
# preferred_element_type). f32 is the default: this net is launch-bound, so bf16 buys ~nothing
# while f32 keeps tight numerical parity with the PyTorch module.
_MATMUL_DTYPE = jnp.float32

_PARAM_ORDER = ("sh1", "r1", "b1", "sh2", "r2", "b2", "sh3", "r3", "b3",
                "fc1w", "fc1b", "fc2w", "fc2b", "lgw", "lgb")


def _conv_out(n, k, s):
    return (n - k) // s + 1


# ---------------------------------------------------------------------------
# One-time parameter preparation (hoisted out of the per-call path).
# ---------------------------------------------------------------------------
def _selection_matrices(H, Ho, k, s):
    """S[kh, i, h] = 1 iff h == s*i + kh  (stride-s row decimation with shift kh)."""
    S = np.zeros((k, Ho, H), np.float32)
    for kh in range(k):
        for i in range(Ho):
            S[kh, i, s * i + kh] = 1.0
    return S


def _toeplitz_rhs(w, W_in, Wo, s):
    """R[kh, w*Cin + c, j*Cout + o] = w[o, c, kh, w - s*j] if 0 <= w - s*j < k else 0."""
    Cout, Cin, k, _ = w.shape
    R = np.zeros((k, W_in * Cin, Wo * Cout), np.float32)
    for kh in range(k):
        for j in range(Wo):
            for kw in range(k):
                wi = s * j + kw
                R[kh, wi * Cin:(wi + 1) * Cin, j * Cout:(j + 1) * Cout] = w[:, :, kh, kw].T
    return R


def prepare_params(params, input_shape=(30, 30)):
    """Convert PyTorch-layout params into kernel-ready operands (run once, outside jit)."""
    H, W = input_shape
    cw1, cb1 = np.asarray(params["conv1_w"]), np.asarray(params["conv1_b"])
    cw2, cb2 = np.asarray(params["conv2_w"]), np.asarray(params["conv2_b"])
    cw3, cb3 = np.asarray(params["conv3_w"]), np.asarray(params["conv3_b"])
    C3 = cw3.shape[0]
    H1, W1 = _conv_out(H, 5, 2), _conv_out(W, 5, 2)
    H2, W2 = _conv_out(H1, 3, 2), _conv_out(W1, 3, 2)
    H3, W3 = _conv_out(H2, 3, 2), _conv_out(W2, 3, 2)

    # fc1 weight: torch flattens conv3 output in (c, h, w) order; re-lay it out so the
    # kernel can consume the (h, (w, c)) activation slab directly: fc1w[h, w*C3+c, n].
    fc1_w = np.asarray(params["fc1_w"])                      # (256, C3*H3*W3)
    n_fc1 = fc1_w.shape[0]
    fc1_w = fc1_w.reshape(n_fc1, C3, H3, W3).transpose(2, 3, 1, 0).reshape(H3, W3 * C3, n_fc1)

    # Logits layer: pad output lanes to a multiple of 128 so the kernel's final store is a
    # full-width, unmasked lane-dense `vst` (biggest single out_spec lever on TPU).
    lgw = np.asarray(params["logits_w"]).T                   # (128, A)
    lgb = np.asarray(params["logits_b"])                     # (A,)
    A = lgw.shape[1]
    A_pad = max(128, -(-A // 128) * 128)
    lgw_pad = np.zeros((lgw.shape[0], A_pad), np.float32)
    lgw_pad[:, :A] = lgw
    lgb_pad = np.zeros((1, A_pad), np.float32)
    lgb_pad[0, :A] = lgb

    prepared = {
        "sh1": _selection_matrices(H, H1, 5, 2),
        "r1": _toeplitz_rhs(cw1, W, W1, 2),
        "b1": np.tile(cb1, W1)[None, :],
        "sh2": _selection_matrices(H1, H2, 3, 2),
        "r2": _toeplitz_rhs(cw2, W1, W2, 2),
        "b2": np.tile(cb2, W2)[None, :],
        "sh3": _selection_matrices(H2, H3, 3, 2),
        "r3": _toeplitz_rhs(cw3, W2, W3, 2),
        "b3": np.tile(cb3, W3)[None, :],
        "fc1w": fc1_w,
        "fc1b": np.asarray(params["fc1_b"])[None, :],
        "fc2w": np.asarray(params["fc2_w"]).T,               # (256, 128)
        "fc2b": np.asarray(params["fc2_b"])[None, :],
        "lgw": lgw_pad,                                      # (128, A_pad)
        "lgb": lgb_pad,                                      # (1, A_pad)
    }
    return {k: jnp.asarray(v) for k, v in prepared.items()}


# ---------------------------------------------------------------------------
# Fused forward kernel: one grid step == one batch element.
# ---------------------------------------------------------------------------
def _policy_fwd_kernel(x_ref, sh1_ref, r1_ref, b1_ref, sh2_ref, r2_ref, b2_ref,
                       sh3_ref, r3_ref, b3_ref, fc1w_ref, fc1b_ref,
                       fc2w_ref, fc2b_ref, lgw_ref, lgb_ref, out_ref):
    def mm(a, b):
        return jnp.dot(a.astype(_MATMUL_DTYPE), b.astype(_MATMUL_DTYPE),
                       preferred_element_type=jnp.float32)

    def conv_relu(x, sh_ref, r_ref, b_ref):
        # x: (H, W*Cin) -> (Ho, Wo*Cout); sum over kernel-row offsets kh.
        acc = None
        for kh in range(sh_ref.shape[0]):
            t = mm(mm(sh_ref[kh], x), r_ref[kh])
            acc = t if acc is None else acc + t
        return jnp.maximum(acc + b_ref[...], 0.0)

    x = x_ref[0]                                         # (H, W)   (Cin == 1)
    y = conv_relu(x, sh1_ref, r1_ref, b1_ref)            # (H1, W1*16)
    y = conv_relu(y, sh2_ref, r2_ref, b2_ref)            # (H2, W2*32)
    y = conv_relu(y, sh3_ref, r3_ref, b3_ref)            # (H3, W3*64)

    # fc1 over torch's .view(B,-1) flatten — the (c,h,w) order is baked into fc1w_ref,
    # so the flatten is just a sum of per-row matmuls (no in-kernel reshape needed).
    z = None
    for h in range(fc1w_ref.shape[0]):
        t = mm(y[h:h + 1, :], fc1w_ref[h])               # (1, 256)
        z = t if z is None else z + t
    z = jnp.maximum(z + fc1b_ref[...], 0.0)                              # (1, 256)
    z = jnp.maximum(mm(z, fc2w_ref[...]) + fc2b_ref[...], 0.0)           # (1, 128)
    logits = mm(z, lgw_ref[...]) + lgb_ref[...]                          # (1, A_pad) fused epilogue
    out_ref[0] = logits.astype(out_ref.dtype)            # full 128-lane unmasked store


def _full_spec(shape):
    zeros = (0,) * len(shape)
    return pl.BlockSpec(shape, lambda b, _z=zeros: _z)   # constant index -> fetched once


def policy_forward(prepared, state, *, num_actions):
    """state: (B, 1, H, W) float32 NCHW -> logits (B, num_actions)."""
    B, _, H, W = state.shape
    A_pad = prepared["lgb"].shape[1]
    x = state.reshape(B, H, W)                           # Cin == 1: lane axis is just W
    operands = [prepared[name] for name in _PARAM_ORDER]
    out = pl.pallas_call(
        _policy_fwd_kernel,
        grid=(B,),
        out_shape=jax.ShapeDtypeStruct((B, 1, A_pad), jnp.float32),
        in_specs=[pl.BlockSpec((1, H, W), lambda b: (b, 0, 0))]
                 + [_full_spec(op.shape) for op in operands],
        out_specs=pl.BlockSpec((1, 1, A_pad), lambda b: (b, 0, 0)),
        compiler_params=pltpu.CompilerParams(dimension_semantics=("parallel",)),
    )(x, *operands)
    return out[:, 0, :num_actions]                       # strip lane padding outside the kernel


# ---------------------------------------------------------------------------
# Params in original PyTorch layout + pure-JAX reference for validation.
# ---------------------------------------------------------------------------
def init_params(key, input_shape=(30, 30), num_actions=4):
    H, W = input_shape
    h1, w1 = _conv_out(H, 5, 2), _conv_out(W, 5, 2)
    h2, w2 = _conv_out(h1, 3, 2), _conv_out(w1, 3, 2)
    h3, w3 = _conv_out(h2, 3, 2), _conv_out(w2, 3, 2)
    conv_out = 64 * h3 * w3                              # same formula as _get_conv_out

    ks = jax.random.split(key, 12)
    s = 0.05
    return {
        "conv1_w": jax.random.normal(ks[0], (16, 1, 5, 5), jnp.float32) * s,
        "conv1_b": jax.random.normal(ks[1], (16,), jnp.float32) * s,
        "conv2_w": jax.random.normal(ks[2], (32, 16, 3, 3), jnp.float32) * s,
        "conv2_b": jax.random.normal(ks[3], (32,), jnp.float32) * s,
        "conv3_w": jax.random.normal(ks[4], (64, 32, 3, 3), jnp.float32) * s,
        "conv3_b": jax.random.normal(ks[5], (64,), jnp.float32) * s,
        "fc1_w": jax.random.normal(ks[6], (256, conv_out), jnp.float32) * s,
        "fc1_b": jax.random.normal(ks[7], (256,), jnp.float32) * s,
        "fc2_w": jax.random.normal(ks[8], (128, 256), jnp.float32) * s,
        "fc2_b": jax.random.normal(ks[9], (128,), jnp.float32) * s,
        "logits_w": jax.random.normal(ks[10], (num_actions, 128), jnp.float32) * s,
        "logits_b": jax.random.normal(ks[11], (num_actions,), jnp.float32) * s,
    }


def _reference_forward(params, state):
    def conv(x, w, b, s):
        y = lax.conv_general_dilated(x, w, (s, s), "VALID",
                                     dimension_numbers=("NCHW", "OIHW", "NCHW"))
        return jnp.maximum(y + b[None, :, None, None], 0.0)
    x = conv(state, params["conv1_w"], params["conv1_b"], 2)
    x = conv(x, params["conv2_w"], params["conv2_b"], 2)
    x = conv(x, params["conv3_w"], params["conv3_b"], 2)
    x = x.reshape(x.shape[0], -1)
    x = jnp.maximum(x @ params["fc1_w"].T + params["fc1_b"], 0.0)
    x = jnp.maximum(x @ params["fc2_w"].T + params["fc2_b"], 0.0)
    return x @ params["logits_w"].T + params["logits_b"]


# TODO(synk): sample_action's Categorical sampling/log_prob is not part of forward();
# it stays in plain JAX outside the kernel.

if __name__ == "__main__":
    key = jax.random.PRNGKey(0)
    pkey, xkey = jax.random.split(key)

    # 30x30 -> 13x13 -> 6x6 -> 2x2, conv_out = 64*2*2 = 256 feeding fc1(.,256).
    input_shape = (30, 30)
    batch = 2
    num_actions = 4

    params = init_params(pkey, input_shape=input_shape, num_actions=num_actions)
    prepared = prepare_params(params, input_shape=input_shape)   # one-time, outside jit
    state = jax.random.normal(xkey, (batch, 1, *input_shape), jnp.float32)

    fwd = jax.jit(policy_forward, static_argnames=("num_actions",))
    logits = jax.block_until_ready(fwd(prepared, state, num_actions=num_actions))
    assert logits.shape == (batch, num_actions)

    ref = _reference_forward(params, state)
    assert jnp.allclose(logits, ref, atol=2e-3, rtol=2e-3), "Pallas vs reference mismatch"

    print("KERNEL_OK")
</pallas_src>

<mosaic_0001>
module attributes {stable_mosaic.version = 11 : i64} {
  func.func @_policy_fwd_kernel(%arg0: i32, %arg1: memref<1x30x30xf32, #tpu.memory_space<vmem>>, %arg2: memref<5x13x30xf32, #tpu.memory_space<vmem>>, %arg3: memref<5x30x208xf32, #tpu.memory_space<vmem>>, %arg4: memref<1x208xf32, #tpu.memory_space<vmem>>, %arg5: memref<3x6x13xf32, #tpu.memory_space<vmem>>, %arg6: memref<3x208x192xf32, #tpu.memory_space<vmem>>, %arg7: memref<1x192xf32, #tpu.memory_space<vmem>>, %arg8: memref<3x2x6xf32, #tpu.memory_space<vmem>>, %arg9: memref<3x192x128xf32, #tpu.memory_space<vmem>>, %arg10: memref<1x128xf32, #tpu.memory_space<vmem>>, %arg11: memref<2x128x256xf32, #tpu.memory_space<vmem>>, %arg12: memref<1x256xf32, #tpu.memory_space<vmem>>, %arg13: memref<256x128xf32, #tpu.memory_space<vmem>>, %arg14: memref<1x128xf32, #tpu.memory_space<vmem>>, %arg15: memref<128x128xf32, #tpu.memory_space<vmem>>, %arg16: memref<1x128xf32, #tpu.memory_space<vmem>>, %arg17: memref<1x1x128xf32, #tpu.memory_space<vmem>>) attributes {dimension_semantics = [#tpu.dimension_semantics<parallel>], iteration_bounds = array<i64: 2>, scalar_prefetch = 0 : i64, scratch_operands = 0 : i64, tpu.core_type = #tpu.core_type<tc>, window_params = [{transform_indices = @transform_0, window_bounds = array<i64: 1, 30, 30>}, {pipeline_mode = #tpu.pipeline_mode<synchronous>, transform_indices = @transform_1, window_bounds = array<i64: 5, 13, 30>}, {pipeline_mode = #tpu.pipeline_mode<synchronous>, transform_indices = @transform_2, window_bounds = array<i64: 5, 30, 208>}, {pipeline_mode = #tpu.pipeline_mode<synchronous>, transform_indices = @transform_3, window_bounds = array<i64: 1, 208>}, {pipeline_mode = #tpu.pipeline_mode<synchronous>, transform_indices = @transform_4, window_bounds = array<i64: 3, 6, 13>}, {pipeline_mode = #tpu.pipeline_mode<synchronous>, transform_indices = @transform_5, window_bounds = array<i64: 3, 208, 192>}, {pipeline_mode = #tpu.pipeline_mode<synchronous>, transform_indices = @transform_6, window_bounds = array<i64: 1, 192>}, {pipeline_mode = #tpu.pipeline_mode<synchronous>, transform_indices = @transform_7, window_bounds = array<i64: 3, 2, 6>}, {pipeline_mode = #tpu.pipeline_mode<synchronous>, transform_indices = @transform_8, window_bounds = array<i64: 3, 192, 128>}, {pipeline_mode = #tpu.pipeline_mode<synchronous>, transform_indices = @transform_9, window_bounds = array<i64: 1, 128>}, {pipeline_mode = #tpu.pipeline_mode<synchronous>, transform_indices = @transform_10, window_bounds = array<i64: 2, 128, 256>}, {pipeline_mode = #tpu.pipeline_mode<synchronous>, transform_indices = @transform_11, window_bounds = array<i64: 1, 256>}, {pipeline_mode = #tpu.pipeline_mode<synchronous>, transform_indices = @transform_12, window_bounds = array<i64: 256, 128>}, {pipeline_mode = #tpu.pipeline_mode<synchronous>, transform_indices = @transform_13, window_bounds = array<i64: 1, 128>}, {pipeline_mode = #tpu.pipeline_mode<synchronous>, transform_indices = @transform_14, window_bounds = array<i64: 128, 128>}, {pipeline_mode = #tpu.pipeline_mode<synchronous>, transform_indices = @transform_15, window_bounds = array<i64: 1, 128>}, {transform_indices = @transform_16, window_bounds = array<i64: 1, 1, 128>}]} {
    %c0 = arith.constant 0 : index
    %c0_0 = arith.constant 0 : index
    %c0_1 = arith.constant 0 : index
    %0 = vector.load %arg1[%c0, %c0_0, %c0_1] : memref<1x30x30xf32, #tpu.memory_space<vmem>>, vector<1x30x30xf32>
    %1 = vector.shape_cast %0 : vector<1x30x30xf32> to vector<30x30xf32>
    %c0_2 = arith.constant 0 : index
    %c0_3 = arith.constant 0 : index
    %c0_4 = arith.constant 0 : index
    %2 = vector.load %arg2[%c0_2, %c0_3, %c0_4] : memref<5x13x30xf32, #tpu.memory_space<vmem>>, vector<1x13x30xf32>
    %3 = vector.shape_cast %2 : vector<1x13x30xf32> to vector<13x30xf32>
    %cst = arith.constant dense<0.000000e+00> : vector<13x30xf32>
    %4 = tpu.matmul %3, %1, %cst {dimension_numbers = #tpu.dot_dimension_numbers<[1], [0], [0], [1], [0, 0, 1, 1], [], []>} : vector<13x30xf32>, vector<30x30xf32>, vector<13x30xf32> -> vector<13x30xf32>
    %c0_5 = arith.constant 0 : index
    %c0_6 = arith.constant 0 : index
    %c0_7 = arith.constant 0 : index
    %5 = vector.load %arg3[%c0_5, %c0_6, %c0_7] : memref<5x30x208xf32, #tpu.memory_space<vmem>>, vector<1x30x208xf32>
    %6 = vector.shape_cast %5 : vector<1x30x208xf32> to vector<30x208xf32>
    %cst_8 = arith.constant dense<0.000000e+00> : vector<13x208xf32>
    %7 = tpu.matmul %4, %6, %cst_8 {dimension_numbers = #tpu.dot_dimension_numbers<[1], [0], [0], [1], [0, 0, 1, 1], [], []>} : vector<13x30xf32>, vector<30x208xf32>, vector<13x208xf32> -> vector<13x208xf32>
    %c1 = arith.constant 1 : index
    %c0_9 = arith.constant 0 : index
    %c0_10 = arith.constant 0 : index
    %8 = vector.load %arg2[%c1, %c0_9, %c0_10] : memref<5x13x30xf32, #tpu.memory_space<vmem>>, vector<1x13x30xf32>
    %9 = vector.shape_cast %8 : vector<1x13x30xf32> to vector<13x30xf32>
    %cst_11 = arith.constant dense<0.000000e+00> : vector<13x30xf32>
    %10 = tpu.matmul %9, %1, %cst_11 {dimension_numbers = #tpu.dot_dimension_numbers<[1], [0], [0], [1], [0, 0, 1, 1], [], []>} : vector<13x30xf32>, vector<30x30xf32>, vector<13x30xf32> -> vector<13x30xf32>
    %c1_12 = arith.constant 1 : index
    %c0_13 = arith.constant 0 : index
    %c0_14 = arith.constant 0 : index
    %11 = vector.load %arg3[%c1_12, %c0_13, %c0_14] : memref<5x30x208xf32, #tpu.memory_space<vmem>>, vector<1x30x208xf32>
    %12 = vector.shape_cast %11 : vector<1x30x208xf32> to vector<30x208xf32>
    %cst_15 = arith.constant dense<0.000000e+00> : vector<13x208xf32>
    %13 = tpu.matmul %10, %12, %cst_15 {dimension_numbers = #tpu.dot_dimension_numbers<[1], [0], [0], [1], [0, 0, 1, 1], [], []>} : vector<13x30xf32>, vector<30x208xf32>, vector<13x208xf32> -> vector<13x208xf32>
    %14 = arith.addf %7, %13 : vector<13x208xf32>
    %c2 = arith.constant 2 : index
    %c0_16 = arith.constant 0 : index
    %c0_17 = arith.constant 0 : index
    %15 = vector.load %arg2[%c2, %c0_16, %c0_17] : memref<5x13x30xf32, #tpu.memory_space<vmem>>, vector<1x13x30xf32>
    %16 = vector.shape_cast %15 : vector<1x13x30xf32> to vector<13x30xf32>
    %cst_18 = arith.constant dense<0.000000e+00> : vector<13x30xf32>
    %17 = tpu.matmul %16, %1, %cst_18 {dimension_numbers = #tpu.dot_dimension_numbers<[1], [0], [0], [1], [0, 0, 1, 1], [], []>} : vector<13x30xf32>, vector<30x30xf32>, vector<13x30xf32> -> vector<13x30xf32>
    %c2_19 = arith.constant 2 : index
    %c0_20 = arith.constant 0 : index
    %c0_21 = arith.constant 0 : index
    %18 = vector.load %arg3[%c2_19, %c0_20, %c0_21] : memref<5x30x208xf32, #tpu.memory_space<vmem>>, vector<1x30x208xf32>
    %19 = vector.shape_cast %18 : vector<1x30x208xf32> to vector<30x208xf32>
    %cst_22 = arith.constant dense<0.000000e+00> : vector<13x208xf32>
    %20 = tpu.matmul %17, %19, %cst_22 {dimension_numbers = #tpu.dot_dimension_numbers<[1], [0], [0], [1], [0, 0, 1, 1], [], []>} : vector<13x30xf32>, vector<30x208xf32>, vector<13x208xf32> -> vector<13x208xf32>
    %21 = arith.addf %14, %20 : vector<13x208xf32>
    %c3 = arith.constant 3 : index
    %c0_23 = arith.constant 0 : index
    %c0_24 = arith.constant 0 : index
    %22 = vector.load %arg2[%c3, %c0_23, %c0_24] : memref<5x13x30xf32, #tpu.memory_space<vmem>>, vector<1x13x30xf32>
    %23 = vector.shape_cast %22 : vector<1x13x30xf32> to vector<13x30xf32>
    %cst_25 = arith.constant dense<0.000000e+00> : vector<13x30xf32>
    %24 = tpu.matmul %23, %1, %cst_25 {dimension_numbers = #tpu.dot_dimension_numbers<[1], [0], [0], [1], [0, 0, 1, 1], [], []>} : vector<13x30xf32>, vector<30x30xf32>, vector<13x30xf32> -> vector<13x30xf32>
    %c3_26 = arith.constant 3 : index
    %c0_27 = arith.constant 0 : index
    %c0_28 = arith.constant 0 : index
    %25 = vector.load %arg3[%c3_26, %c0_27, %c0_28] : memref<5x30x208xf32, #tpu.memory_space<vmem>>, vector<1x30x208xf32>
    %26 = vector.shape_cast %25 : vector<1x30x208xf32> to vector<30x208xf32>
    %cst_29 = arith.constant dense<0.000000e+00> : vector<13x208xf32>
    %27 = tpu.matmul %24, %26, %cst_29 {dimension_numbers = #tpu.dot_dimension_numbers<[1], [0], [0], [1], [0, 0, 1, 1], [], []>} : vector<13x30xf32>, vector<30x208xf32>, vector<13x208xf32> -> vector<13x208xf32>
    %28 = arith.addf %21, %27 : vector<13x208xf32>
    %c4 = arith.constant 4 : index
    %c0_30 = arith.constant 0 : index
    %c0_31 = arith.constant 0 : index
    %29 = vector.load %arg2[%c4, %c0_30, %c0_31] : memref<5x13x30xf32, #tpu.memory_space<vmem>>, vector<1x13x30xf32>
    %30 = vector.shape_cast %29 : vector<1x13x30xf32> to vector<13x30xf32>
    %cst_32 = arith.constant dense<0.000000e+00> : vector<13x30xf32>
    %31 = tpu.matmul %30, %1, %cst_32 {dimension_numbers = #tpu.dot_dimension_numbers<[1], [0], [0], [1], [0, 0, 1, 1], [], []>} : vector<13x30xf32>, vector<30x30xf32>, vector<13x30xf32> -> vector<13x30xf32>
    %c4_33 = arith.constant 4 : index
    %c0_34 = arith.constant 0 : index
    %c0_35 = arith.constant 0 : index
    %32 = vector.load %arg3[%c4_33, %c0_34, %c0_35] : memref<5x30x208xf32, #tpu.memory_space<vmem>>, vector<1x30x208xf32>
    %33 = vector.shape_cast %32 : vector<1x30x208xf32> to vector<30x208xf32>
    %cst_36 = arith.constant dense<0.000000e+00> : vector<13x208xf32>
    %34 = tpu.matmul %31, %33, %cst_36 {dimension_numbers = #tpu.dot_dimension_numbers<[1], [0], [0], [1], [0, 0, 1, 1], [], []>} : vector<13x30xf32>, vector<30x208xf32>, vector<13x208xf32> -> vector<13x208xf32>
    %35 = arith.addf %28, %34 : vector<13x208xf32>
    %c0_37 = arith.constant 0 : index
    %c0_38 = arith.constant 0 : index
    %36 = vector.load %arg4[%c0_37, %c0_38] : memref<1x208xf32, #tpu.memory_space<vmem>>, vector<1x208xf32>
    %37 = vector.broadcast %36 : vector<1x208xf32> to vector<13x208xf32>
    %38 = arith.addf %35, %37 : vector<13x208xf32>
    %cst_39 = arith.constant 0.000000e+00 : f32
    %39 = vector.broadcast %cst_39 : f32 to vector<13x208xf32>
    %40 = arith.maximumf %38, %39 : vector<13x208xf32>
    %c0_40 = arith.constant 0 : index
    %c0_41 = arith.constant 0 : index
    %c0_42 = arith.constant 0 : index
    %41 = vector.load %arg5[%c0_40, %c0_41, %c0_42] : memref<3x6x13xf32, #tpu.memory_space<vmem>>, vector<1x6x13xf32>
    %42 = vector.shape_cast %41 : vector<1x6x13xf32> to vector<6x13xf32>
    %cst_43 = arith.constant dense<0.000000e+00> : vector<6x208xf32>
    %43 = tpu.matmul %42, %40, %cst_43 {dimension_numbers = #tpu.dot_dimension_numbers<[1], [0], [0], [1], [0, 0, 1, 1], [], []>} : vector<6x13xf32>, vector<13x208xf32>, vector<6x208xf32> -> vector<6x208xf32>
    %c0_44 = arith.constant 0 : index
    %c0_45 = arith.constant 0 : index
    %c0_46 = arith.constant 0 : index
    %44 = vector.load %arg6[%c0_44, %c0_45, %c0_46] : memref<3x208x192xf32, #tpu.memory_space<vmem>>, vector<1x208x192xf32>
    %45 = vector.shape_cast %44 : vector<1x208x192xf32> to vector<208x192xf32>
    %cst_47 = arith.constant dense<0.000000e+00> : vector<6x192xf32>
    %46 = tpu.matmul %43, %45, %cst_47 {dimension_numbers = #tpu.dot_dimension_numbers<[1], [0], [0], [1], [0, 0, 1, 1], [], []>} : vector<6x208xf32>, vector<208x192xf32>, vector<6x192xf32> -> vector<6x192xf32>
    %c1_48 = arith.constant 1 : index
    %c0_49 = arith.constant 0 : index
    %c0_50 = arith.constant 0 : index
    %47 = vector.load %arg5[%c1_48, %c0_49, %c0_50] : memref<3x6x13xf32, #tpu.memory_space<vmem>>, vector<1x6x13xf32>
    %48 = vector.shape_cast %47 : vector<1x6x13xf32> to vector<6x13xf32>
    %cst_51 = arith.constant dense<0.000000e+00> : vector<6x208xf32>
    %49 = tpu.matmul %48, %40, %cst_51 {dimension_numbers = #tpu.dot_dimension_numbers<[1], [0], [0], [1], [0, 0, 1, 1], [], []>} : vector<6x13xf32>, vector<13x208xf32>, vector<6x208xf32> -> vector<6x208xf32>
    %c1_52 = arith.constant 1 : index
    %c0_53 = arith.constant 0 : index
    %c0_54 = arith.constant 0 : index
    %50 = vector.load %arg6[%c1_52, %c0_53, %c0_54] : memref<3x208x192xf32, #tpu.memory_space<vmem>>, vector<1x208x192xf32>
    %51 = vector.shape_cast %50 : vector<1x208x192xf32> to vector<208x192xf32>
    %cst_55 = arith.constant dense<0.000000e+00> : vector<6x192xf32>
    %52 = tpu.matmul %49, %51, %cst_55 {dimension_numbers = #tpu.dot_dimension_numbers<[1], [0], [0], [1], [0, 0, 1, 1], [], []>} : vector<6x208xf32>, vector<208x192xf32>, vector<6x192xf32> -> vector<6x192xf32>
    %53 = arith.addf %46, %52 : vector<6x192xf32>
    %c2_56 = arith.constant 2 : index
    %c0_57 = arith.constant 0 : index
    %c0_58 = arith.constant 0 : index
    %54 = vector.load %arg5[%c2_56, %c0_57, %c0_58] : memref<3x6x13xf32, #tpu.memory_space<vmem>>, vector<1x6x13xf32>
    %55 = vector.shape_cast %54 : vector<1x6x13xf32> to vector<6x13xf32>
    %cst_59 = arith.constant dense<0.000000e+00> : vector<6x208xf32>
    %56 = tpu.matmul %55, %40, %cst_59 {dimension_numbers = #tpu.dot_dimension_numbers<[1], [0], [0], [1], [0, 0, 1, 1], [], []>} : vector<6x13xf32>, vector<13x208xf32>, vector<6x208xf32> -> vector<6x208xf32>
    %c2_60 = arith.constant 2 : index
    %c0_61 = arith.constant 0 : index
    %c0_62 = arith.constant 0 : index
    %57 = vector.load %arg6[%c2_60, %c0_61, %c0_62] : memref<3x208x192xf32, #tpu.memory_space<vmem>>, vector<1x208x192xf32>
    %58 = vector.shape_cast %57 : vector<1x208x192xf32> to vector<208x192xf32>
    %cst_63 = arith.constant dense<0.000000e+00> : vector<6x192xf32>
    %59 = tpu.matmul %56, %58, %cst_63 {dimension_numbers = #tpu.dot_dimension_numbers<[1], [0], [0], [1], [0, 0, 1, 1], [], []>} : vector<6x208xf32>, vector<208x192xf32>, vector<6x192xf32> -> vector<6x192xf32>
    %60 = arith.addf %53, %59 : vector<6x192xf32>
    %c0_64 = arith.constant 0 : index
    %c0_65 = arith.constant 0 : index
    %61 = vector.load %arg7[%c0_64, %c0_65] : memref<1x192xf32, #tpu.memory_space<vmem>>, vector<1x192xf32>
    %62 = vector.broadcast %61 : vector<1x192xf32> to vector<6x192xf32>
    %63 = arith.addf %60, %62 : vector<6x192xf32>
    %cst_66 = arith.constant 0.000000e+00 : f32
    %64 = vector.broadcast %cst_66 : f32 to vector<6x192xf32>
    %65 = arith.maximumf %63, %64 : vector<6x192xf32>
    %c0_67 = arith.constant 0 : index
    %c0_68 = arith.constant 0 : index
    %c0_69 = arith.constant 0 : index
    %66 = vector.load %arg8[%c0_67, %c0_68, %c0_69] : memref<3x2x6xf32, #tpu.memory_space<vmem>>, vector<1x2x6xf32>
    %67 = vector.shape_cast %66 : vector<1x2x6xf32> to vector<2x6xf32>
    %cst_70 = arith.constant dense<0.000000e+00> : vector<2x192xf32>
    %68 = tpu.matmul %67, %65, %cst_70 {dimension_numbers = #tpu.dot_dimension_numbers<[1], [0], [0], [1], [0, 0, 1, 1], [], []>} : vector<2x6xf32>, vector<6x192xf32>, vector<2x192xf32> -> vector<2x192xf32>
    %c0_71 = arith.constant 0 : index
    %c0_72 = arith.constant 0 : index
    %c0_73 = arith.constant 0 : index
    %69 = vector.load %arg9[%c0_71, %c0_72, %c0_73] : memref<3x192x128xf32, #tpu.memory_space<vmem>>, vector<1x192x128xf32>
    %70 = vector.shape_cast %69 : vector<1x192x128xf32> to vector<192x128xf32>
    %cst_74 = arith.constant dense<0.000000e+00> : vector<2x128xf32>
    %71 = tpu.matmul %68, %70, %cst_74 {dimension_numbers = #tpu.dot_dimension_numbers<[1], [0], [0], [1], [0, 0, 1, 1], [], []>} : vector<2x192xf32>, vector<192x128xf32>, vector<2x128xf32> -> vector<2x128xf32>
    %c1_75 = arith.constant 1 : index
    %c0_76 = arith.constant 0 : index
    %c0_77 = arith.constant 0 : index
    %72 = vector.load %arg8[%c1_75, %c0_76, %c0_77] : memref<3x2x6xf32, #tpu.memory_space<vmem>>, vector<1x2x6xf32>
    %73 = vector.shape_cast %72 : vector<1x2x6xf32> to vector<2x6xf32>
    %cst_78 = arith.constant dense<0.000000e+00> : vector<2x192xf32>
    %74 = tpu.matmul %73, %65, %cst_78 {dimension_numbers = #tpu.dot_dimension_numbers<[1], [0], [0], [1], [0, 0, 1, 1], [], []>} : vector<2x6xf32>, vector<6x192xf32>, vector<2x192xf32> -> vector<2x192xf32>
    %c1_79 = arith.constant 1 : index
    %c0_80 = arith.constant 0 : index
    %c0_81 = arith.constant 0 : index
    %75 = vector.load %arg9[%c1_79, %c0_80, %c0_81] : memref<3x192x128xf32, #tpu.memory_space<vmem>>, vector<1x192x128xf32>
    %76 = vector.shape_cast %75 : vector<1x192x128xf32> to vector<192x128xf32>
    %cst_82 = arith.constant dense<0.000000e+00> : vector<2x128xf32>
    %77 = tpu.matmul %74, %76, %cst_82 {dimension_numbers = #tpu.dot_dimension_numbers<[1], [0], [0], [1], [0, 0, 1, 1], [], []>} : vector<2x192xf32>, vector<192x128xf32>, vector<2x128xf32> -> vector<2x128xf32>
    %78 = arith.addf %71, %77 : vector<2x128xf32>
    %c2_83 = arith.constant 2 : index
    %c0_84 = arith.constant 0 : index
    %c0_85 = arith.constant 0 : index
    %79 = vector.load %arg8[%c2_83, %c0_84, %c0_85] : memref<3x2x6xf32, #tpu.memory_space<vmem>>, vector<1x2x6xf32>
    %80 = vector.shape_cast %79 : vector<1x2x6xf32> to vector<2x6xf32>
    %cst_86 = arith.constant dense<0.000000e+00> : vector<2x192xf32>
    %81 = tpu.matmul %80, %65, %cst_86 {dimension_numbers = #tpu.dot_dimension_numbers<[1], [0], [0], [1], [0, 0, 1, 1], [], []>} : vector<2x6xf32>, vector<6x192xf32>, vector<2x192xf32> -> vector<2x192xf32>
    %c2_87 = arith.constant 2 : index
    %c0_88 = arith.constant 0 : index
    %c0_89 = arith.constant 0 : index
    %82 = vector.load %arg9[%c2_87, %c0_88, %c0_89] : memref<3x192x128xf32, #tpu.memory_space<vmem>>, vector<1x192x128xf32>
    %83 = vector.shape_cast %82 : vector<1x192x128xf32> to vector<192x128xf32>
    %cst_90 = arith.constant dense<0.000000e+00> : vector<2x128xf32>
    %84 = tpu.matmul %81, %83, %cst_90 {dimension_numbers = #tpu.dot_dimension_numbers<[1], [0], [0], [1], [0, 0, 1, 1], [], []>} : vector<2x192xf32>, vector<192x128xf32>, vector<2x128xf32> -> vector<2x128xf32>
    %85 = arith.addf %78, %84 : vector<2x128xf32>
    %c0_91 = arith.constant 0 : index
    %c0_92 = arith.constant 0 : index
    %86 = vector.load %arg10[%c0_91, %c0_92] : memref<1x128xf32, #tpu.memory_space<vmem>>, vector<1x128xf32>
    %87 = vector.broadcast %86 : vector<1x128xf32> to vector<2x128xf32>
    %88 = arith.addf %85, %87 : vector<2x128xf32>
    %cst_93 = arith.constant 0.000000e+00 : f32
    %89 = vector.broadcast %cst_93 : f32 to vector<2x128xf32>
    %90 = arith.maximumf %88, %89 : vector<2x128xf32>
    %91 = vector.extract_strided_slice %90 {offsets = [0, 0], sizes = [1, 128], strides = [1, 1]} : vector<2x128xf32> to vector<1x128xf32>
    %c0_94 = arith.constant 0 : index
    %c0_95 = arith.constant 0 : index
    %c0_96 = arith.constant 0 : index
    %92 = vector.load %arg11[%c0_94, %c0_95, %c0_96] : memref<2x128x256xf32, #tpu.memory_space<vmem>>, vector<1x128x256xf32>
    %93 = vector.shape_cast %92 : vector<1x128x256xf32> to vector<128x256xf32>
    %cst_97 = arith.constant dense<0.000000e+00> : vector<1x256xf32>
    %94 = tpu.matmul %91, %93, %cst_97 {dimension_numbers = #tpu.dot_dimension_numbers<[1], [0], [0], [1], [0, 0, 1, 1], [], []>} : vector<1x128xf32>, vector<128x256xf32>, vector<1x256xf32> -> vector<1x256xf32>
    %95 = vector.extract_strided_slice %90 {offsets = [1, 0], sizes = [1, 128], strides = [1, 1]} : vector<2x128xf32> to vector<1x128xf32>
    %c1_98 = arith.constant 1 : index
    %c0_99 = arith.constant 0 : index
    %c0_100 = arith.constant 0 : index
    %96 = vector.load %arg11[%c1_98, %c0_99, %c0_100] : memref<2x128x256xf32, #tpu.memory_space<vmem>>, vector<1x128x256xf32>
    %97 = vector.shape_cast %96 : vector<1x128x256xf32> to vector<128x256xf32>
    %cst_101 = arith.constant dense<0.000000e+00> : vector<1x256xf32>
    %98 = tpu.matmul %95, %97, %cst_101 {dimension_numbers = #tpu.dot_dimension_numbers<[1], [0], [0], [1], [0, 0, 1, 1], [], []>} : vector<1x128xf32>, vector<128x256xf32>, vector<1x256xf32> -> vector<1x256xf32>
    %99 = arith.addf %94, %98 : vector<1x256xf32>
    %c0_102 = arith.constant 0 : index
    %c0_103 = arith.constant 0 : index
    %100 = vector.load %arg12[%c0_102, %c0_103] : memref<1x256xf32, #tpu.memory_space<vmem>>, vector<1x256xf32>
    %101 = arith.addf %99, %100 : vector<1x256xf32>
    %cst_104 = arith.constant 0.000000e+00 : f32
    %102 = vector.broadcast %cst_104 : f32 to vector<1x256xf32>
    %103 = arith.maximumf %101, %102 : vector<1x256xf32>
    %c0_105 = arith.constant 0 : index
    %c0_106 = arith.constant 0 : index
    %104 = vector.load %arg13[%c0_105, %c0_106] : memref<256x128xf32, #tpu.memory_space<vmem>>, vector<256x128xf32>
    %cst_107 = arith.constant dense<0.000000e+00> : vector<1x128xf32>
    %105 = tpu.matmul %103, %104, %cst_107 {dimension_numbers = #tpu.dot_dimension_numbers<[1], [0], [0], [1], [0, 0, 1, 1], [], []>} : vector<1x256xf32>, vector<256x128xf32>, vector<1x128xf32> -> vector<1x128xf32>
    %c0_108 = arith.constant 0 : index
    %c0_109 = arith.constant 0 : index
    %106 = vector.load %arg14[%c0_108, %c0_109] : memref<1x128xf32, #tpu.memory_space<vmem>>, vector<1x128xf32>
    %107 = arith.addf %105, %106 : vector<1x128xf32>
    %cst_110 = arith.constant 0.000000e+00 : f32
    %108 = vector.broadcast %cst_110 : f32 to vector<1x128xf32>
    %109 = arith.maximumf %107, %108 : vector<1x128xf32>
    %c0_111 = arith.constant 0 : index
    %c0_112 = arith.constant 0 : index
    %110 = vector.load %arg15[%c0_111, %c0_112] : memref<128x128xf32, #tpu.memory_space<vmem>>, vector<128x128xf32>
    %cst_113 = arith.constant dense<0.000000e+00> : vector<1x128xf32>
    %111 = tpu.matmul %109, %110, %cst_113 {dimension_numbers = #tpu.dot_dimension_numbers<[1], [0], [0], [1], [0, 0, 1, 1], [], []>} : vector<1x128xf32>, vector<128x128xf32>, vector<1x128xf32> -> vector<1x128xf32>
    %c0_114 = arith.constant 0 : index
    %c0_115 = arith.constant 0 : index
    %112 = vector.load %arg16[%c0_114, %c0_115] : memref<1x128xf32, #tpu.memory_space<vmem>>, vector<1x128xf32>
    %113 = arith.addf %111, %112 : vector<1x128xf32>
    %c0_116 = arith.constant 0 : index
    %c0_117 = arith.constant 0 : index
    %c0_118 = arith.constant 0 : index
    %114 = vector.load %arg17[%c0_116, %c0_117, %c0_118] : memref<1x1x128xf32, #tpu.memory_space<vmem>>, vector<1x1x128xf32>
    %115 = vector.shape_cast %114 : vector<1x1x128xf32> to vector<1x128xf32>
    %116 = vector.shape_cast %113 : vector<1x128xf32> to vector<1x1x128xf32>
    tpu.vector_store %arg17[%c0_116, %c0_117, %c0_118], %116 {strides = array<i32>} : memref<1x1x128xf32, #tpu.memory_space<vmem>>, vector<1x1x128xf32>,
    return
  }
  func.func @transform_0(%arg0: i32) -> (i32, i32, i32) {
    %c0_i32 = arith.constant 0 : i32
    %c0_i32_0 = arith.constant 0 : i32
    %c0_i32_1 = arith.constant 0 : i32
    return %arg0, %c0_i32, %c0_i32_0 : i32, i32, i32
  }
  func.func @transform_1(%arg0: i32) -> (i32, i32, i32) {
    %c0_i32 = arith.constant 0 : i32
    %c0_i32_0 = arith.constant 0 : i32
    %c0_i32_1 = arith.constant 0 : i32
    %c0_i32_2 = arith.constant 0 : i32
    return %c0_i32, %c0_i32_0, %c0_i32_1 : i32, i32, i32
  }
  func.func @transform_2(%arg0: i32) -> (i32, i32, i32) {
    %c0_i32 = arith.constant 0 : i32
    %c0_i32_0 = arith.constant 0 : i32
    %c0_i32_1 = arith.constant 0 : i32
    %c0_i32_2 = arith.constant 0 : i32
    return %c0_i32, %c0_i32_0, %c0_i32_1 : i32, i32, i32
  }
  func.func @transform_3(%arg0: i32) -> (i32, i32) {
    %c0_i32 = arith.constant 0 : i32
    %c0_i32_0 = arith.constant 0 : i32
    %c0_i32_1 = arith.constant 0 : i32
    return %c0_i32, %c0_i32_0 : i32, i32
  }
  func.func @transform_4(%arg0: i32) -> (i32, i32, i32) {
    %c0_i32 = arith.constant 0 : i32
    %c0_i32_0 = arith.constant 0 : i32
    %c0_i32_1 = arith.constant 0 : i32
    %c0_i32_2 = arith.constant 0 : i32
    return %c0_i32, %c0_i32_0, %c0_i32_1 : i32, i32, i32
  }
  func.func @transform_5(%arg0: i32) -> (i32, i32, i32) {
    %c0_i32 = arith.constant 0 : i32
    %c0_i32_0 = arith.constant 0 : i32
    %c0_i32_1 = arith.constant 0 : i32
    %c0_i32_2 = arith.constant 0 : i32
    return %c0_i32, %c0_i32_0, %c0_i32_1 : i32, i32, i32
  }
  func.func @transform_6(%arg0: i32) -> (i32, i32) {
    %c0_i32 = arith.constant 0 : i32
    %c0_i32_0 = arith.constant 0 : i32
    %c0_i32_1 = arith.constant 0 : i32
    return %c0_i32, %c0_i32_0 : i32, i32
  }
  func.func @transform_7(%arg0: i32) -> (i32, i32, i32) {
    %c0_i32 = arith.constant 0 : i32
    %c0_i32_0 = arith.constant 0 : i32
    %c0_i32_1 = arith.constant 0 : i32
    %c0_i32_2 = arith.constant 0 : i32
    return %c0_i32, %c0_i32_0, %c0_i32_1 : i32, i32, i32
  }
  func.func @transform_8(%arg0: i32) -> (i32, i32, i32) {
    %c0_i32 = arith.constant 0 : i32
    %c0_i32_0 = arith.constant 0 : i32
    %c0_i32_1 = arith.constant 0 : i32
    %c0_i32_2 = arith.constant 0 : i32
    return %c0_i32, %c0_i32_0, %c0_i32_1 : i32, i32, i32
  }
  func.func @transform_9(%arg0: i32) -> (i32, i32) {
    %c0_i32 = arith.constant 0 : i32
    %c0_i32_0 = arith.constant 0 : i32
    %c0_i32_1 = arith.constant 0 : i32
    return %c0_i32, %c0_i32_0 : i32, i32
  }
  func.func @transform_10(%arg0: i32) -> (i32, i32, i32) {
    %c0_i32 = arith.constant 0 : i32
    %c0_i32_0 = arith.constant 0 : i32
    %c0_i32_1 = arith.constant 0 : i32
    %c0_i32_2 = arith.constant 0 : i32
    return %c0_i32, %c0_i32_0, %c0_i32_1 : i32, i32, i32
  }
  func.func @transform_11(%arg0: i32) -> (i32, i32) {
    %c0_i32 = arith.constant 0 : i32
    %c0_i32_0 = arith.constant 0 : i32
    %c0_i32_1 = arith.constant 0 : i32
    return %c0_i32, %c0_i32_0 : i32, i32
  }
  func.func @transform_12(%arg0: i32) -> (i32, i32) {
    %c0_i32 = arith.constant 0 : i32
    %c0_i32_0 = arith.constant 0 : i32
    %c0_i32_1 = arith.constant 0 : i32
    return %c0_i32, %c0_i32_0 : i32, i32
  }
  func.func @transform_13(%arg0: i32) -> (i32, i32) {
    %c0_i32 = arith.constant 0 : i32
    %c0_i32_0 = arith.constant 0 : i32
    %c0_i32_1 = arith.constant 0 : i32
    return %c0_i32, %c0_i32_0 : i32, i32
  }
  func.func @transform_14(%arg0: i32) -> (i32, i32) {
    %c0_i32 = arith.constant 0 : i32
    %c0_i32_0 = arith.constant 0 : i32
    %c0_i32_1 = arith.constant 0 : i32
    return %c0_i32, %c0_i32_0 : i32, i32
  }
  func.func @transform_15(%arg0: i32) -> (i32, i32) {
    %c0_i32 = arith.constant 0 : i32
    %c0_i32_0 = arith.constant 0 : i32
    %c0_i32_1 = arith.constant 0 : i32
    return %c0_i32, %c0_i32_0 : i32, i32
  }
  func.func @transform_16(%arg0: i32) -> (i32, i32, i32) {
    %c0_i32 = arith.constant 0 : i32
    %c0_i32_0 = arith.constant 0 : i32
    %c0_i32_1 = arith.constant 0 : i32
    return %arg0, %c0_i32, %c0_i32_0 : i32, i32, i32
  }
}

</mosaic_0001>

<bundles_post_ra>
// kernel: policy_forward.1
= control target key start
LH: loop header
LB: loop body
LE: loop exit
PB: predicated region body
PF: predicated region fallthrough
CT: control target
= control target key end

     0   :  { %s5825_s0 = inlined_call_operand.vmem [shape: f32[2,30,30], index: 0, kind: input, shape index: {}]   ;;  %s5826_s1 = inlined_call_operand.vmem [shape: f32[5,13,30], index: 1, kind: input, shape index: {}]   ;;  %s5827_s2 = inlined_call_operand.vmem [shape: f32[5,30,208], index: 2, kind: input, shape index: {}]   ;;  %s5828_s3 = inlined_call_operand.vmem [shape: f32[1,208], index: 3, kind: input, shape index: {}]   ;;  %s5829_s4 = inlined_call_operand.vmem [shape: f32[3,6,13], index: 4, kind: input, shape index: {}]   ;;  %s5830_s5 = inlined_call_operand.vmem [shape: f32[3,208,192], index: 5, kind: input, shape index: {}]   ;;  %s5831_s6 = inlined_call_operand.vmem [shape: f32[1,192], index: 6, kind: input, shape index: {}]   ;;  %s5832_s7 = inlined_call_operand.vmem [shape: f32[3,2,6], index: 7, kind: input, shape index: {}]   ;;  %s5833_s8 = inlined_call_operand.vmem [shape: f32[3,192,128], index: 8, kind: input, shape index: {}]   ;;  %s5834_s9 = inlined_call_operand.vmem [shape: f32[1,128], index: 9, kind: input, shape index: {}]   ;;  %s5835_s10 = inlined_call_operand.vmem [shape: f32[2,128,256], index: 10, kind: input, shape index: {}]   ;;  %s5836_s11 = inlined_call_operand.vmem [shape: f32[1,256], index: 11, kind: input, shape index: {}]   ;;  %s5837_s12 = inlined_call_operand.vmem [shape: f32[256,128], index: 12, kind: input, shape index: {}]   ;;  %s5838_s13 = inlined_call_operand.vmem [shape: f32[1,128], index: 13, kind: input, shape index: {}]   ;;  %s5839_s14 = inlined_call_operand.vmem [shape: f32[128,128], index: 14, kind: input, shape index: {}]   ;;  %s5840_s15 = inlined_call_operand.vmem [shape: f32[1,128], index: 15, kind: input, shape index: {}]   ;;  %s5841_s16 = inlined_call_operand.hbm [shape: f32[2,1,128], index: 16, kind: output, shape index: {}]  }
   0x1   :  { %5846 = sst [smem:[#allocation9_spill]] %s5825_s0 }
   0x2   :  { %5847 = sst [smem:[#allocation10_spill]] %s5826_s1 }
   0x3   :  { %21 = vsyncpa [#allocation3], 0 }
   0x4   :  { %23 = vsyncpa [#allocation3 + $0x1], 0  ;;  %s4317_s21 = smov 0   ;;  %s4319_s22 = smov 0  }
   0x5   :  { %s4321_s23 = smov 0   ;;  %s4323_s24 = smov 0  }
   0x6 LB: > { %5848 = sst [smem:[#allocation5_spill]] %s4221_s23  ;;  %s4338_s25 = sadd.s32 4294967295, %s4225_s24   ;;  %s4225_s24 = sphi %s4323_s24, %s5861_s24   ;;  %s4221_s23 = sphi %s4321_s23, %s5863_s23   ;;  %s4217_s22 = sphi %s4319_s22, %s5865_s22   ;;  %s4213_s21 = sphi %s4317_s21, %s5864_s21  }
   0x7   : > { %s3126_s26 = sadd.s32 4294967294, %s4225_s24   ;;  %s4342_s27 = sadd.s32 1, %s4225_s24  }
   0x8   : > { %5849 = sst [smem:[#allocation6_spill]] %s4342_s27  ;;  %s377_s28 = sadd.s32 1, %s4221_s23 }
   0x9   : > { %s374_s29 = ssub.s32 %s4225_s24, %s4342_s27  ;;  %p387_p0 = scmp.ne.s32.totalorder %s4221_s23, %s4217_s22 }
   0xa   : > { %p375_p1 = scmp.eq.s32.totalorder %s374_s29, 0  ;;  %p388_p2 = scmp.eq.s32.totalorder %s4338_s25, 1 }
   0xb   : > { %p393_p3 = scmp.ne.s32.totalorder %s4217_s22, %s4213_s21  ;;  %p394_p4 = scmp.eq.s32.totalorder %s3126_s26, 1 }
   0xc   : > { %s4353_s30 = scalar_select %p375_p1, %s4221_s23, %s377_s28  }
   0xd   : > { %p4355_p5 = por %p388_p2, %p387_p0  ;;  %p4359_p6 = por %p394_p4, %p393_p3 }
   0xe   : > { %5850 = sst [smem:[#allocation7_spill]] %s4353_s30  ;;  %p3129_p7 = scmp.ge.s32.totalorder %s4225_s24, 1 }
   0xf   : > { %s5852_s17 = scalar_select %p4359_p6, 1, 0 }
  0x10   : > { %p465_p8 = scmp.lt.s32.totalorder %s4225_s24, 3 }
  0x11   : > { %5853 = sst [smem:[#allocation8_spill]] %s5852_s17 }
  0x12   : > { %p466_p9 = pnand %p3129_p7, %p465_p8 }
  0x13   : > { %p514_p10 = scmp.lt.s32.totalorder (!%p466_p9), %s4338_s25, 1  ;;  %s5854_s1 = sld [smem:[#allocation10_spill]] (!%p466_p9)  ;;  %vm525_vm0 = vcmask (!%p466_p9), 244736   ;;  %vm532_vm1 = vcmask (!%p466_p9), 1045504   ;;  %vm4227_vm2 = vmmov (!%p466_p9), 1   ;;  %v3141_v17 = vld [vmem:[%s5827_s2 + $0x48] sm:$0xff] (!%p466_p9) }
  0x14   : > { %469 = sbr.rel (%p466_p9) target bundleno = 2464 (0x9a0), region = 84  ;;  %s5855_s30 = sld [smem:[#allocation9_spill]] (!%p466_p9)  ;;  %vm4376_vm3 = vmpackc.low (!%p466_p9), %vm532_vm1, %vm4227_vm2  ;;  %v3143_v18 = vld [vmem:[%s5827_s2 + $0x58] sm:$0xff] (!%p466_p9)  ;;  %v3140_v20 = vld [vmem:[%s5827_s2 + $0x40] sm:$0xff] (!%p466_p9)  ;;  %v4228_v32 = vmov (!%p466_p9), 0.0   ;;  %vm1473_vm4 = vcmask (!%p466_p9), 1044480  }
  0x15   : > { %v3616_v19 = vpack.c.bf16 (!%p466_p9), %v3143_v18, %v3141_v17  ;;  %v3142_v21 = vld [vmem:[%s5827_s2 + $0x50] sm:$0xff] (!%p466_p9)  ;;  %v3145_v23 = vld [vmem:[%s5827_s2 + $0x68] sm:$0xff] (!%p466_p9)  ;;  %v3147_v24 = vld [vmem:[%s5827_s2 + $0x78] sm:$0x3f] (!%p466_p9)  ;;  %788 = vmatprep.mubr.f32.mxu0 (!%p466_p9), %v4228_v32  ;;  %vm1469_vm6 = vcmask (!%p466_p9), 105472   ;;  %vm1732_vm7 = vcmask (!%p466_p9), 654336  }
  0x16   : > { %v3618_v22 = vpack.c.bf16 (!%p466_p9), %v3142_v21, %v3140_v20  ;;  %v3144_v25 = vld [vmem:[%s5827_s2 + $0x60] sm:$0xff] (!%p466_p9)  ;;  %v3620_v26 = vpack.c.bf16 (!%p466_p9), %v3147_v24, %v3145_v23  ;;  %v3146_v27 = vld [vmem:[%s5827_s2 + $0x70] sm:$0x3f] (!%p466_p9)  ;;  %v612_v29 = vld [vmem:[%s5827_s2 + $0x8] sm:$0xff] (!%p466_p9)  ;;  %vm2103_vm8 = vcmask (!%p466_p9), 48128   ;;  %vm2309_vm9 = vcmask (!%p466_p9), 523264  }
  0x17   : > { %3617 = vmatprep.subr.bf16.mxu0 (!%p466_p9), %v3616_v19  ;;  %v3623_v28 = vpack.c.bf16 (!%p466_p9), %v3146_v27, %v3144_v25  ;;  %v614_v30 = vld [vmem:[%s5827_s2 + $0x18] sm:$0xff] (!%p466_p9)  ;;  %v611_v35 = vld [vmem:[%s5827_s2] sm:$0xff] (!%p466_p9)  ;;  %v613_v36 = vld [vmem:[%s5827_s2 + $0x10] sm:$0xff] (!%p466_p9)  ;;  %v1450_v25 = vlaneseq (!%p466_p9)  ;;  %vm4230_vm10 = vmmov (!%p466_p9), 0   ;;  %s512_s19 = sand.u32 (!%p466_p9), 1, %s4217_s22   ;;  %s3420_s28 = sshll.u32 (!%p466_p9), %s4338_s25, 4 }
  0x18   : > { %3619 = vmatpush1.bf16.msra.mxu0 (!%p466_p9), %v3618_v22  ;;  %v3626_v31 = vpack.c.bf16 (!%p466_p9), %v614_v30, %v612_v29  ;;  %v616_v37 = vld [vmem:[%s5827_s2 + $0x28] sm:$0xff] (!%p466_p9)  ;;  %v618_v38 = vld [vmem:[%s5827_s2 + $0x38] sm:$0x3f] (!%p466_p9)  ;;  %v3628_v39 = vpack.c.bf16 (!%p466_p9), %v613_v36, %v611_v35  ;;  %v615_v42 = vld [vmem:[%s5827_s2 + $0x20] sm:$0xff] (!%p466_p9)  ;;  %s513_s29 = scalar_lea.vmem (!%p466_p9), [#allocation2], %s512_s19  ;;  %s5783_s18 = scalar_lea.hbm (!%p466_p9), %s5841_s16, %s3420_s28 }
  0x19   : > { %v523_v0 = vld [vmem:[%s5854_s1] sm:$0xff] (!%p466_p9)  ;;  %v524_v8 = vld [vmem:[%s5854_s1 + $0x8] sm:$0x1f] (!%p466_p9)  ;;  %v3135_v9 = vld [vmem:[%s5854_s1 + $0x10] sm:$0xff] (!%p466_p9)  ;;  %3622 = vmatprep.subr.msk.bf16.mxu0 (!%p466_p9), %vm4376_vm3, %v3620_v26  ;;  %v3630_v41 = vpack.c.bf16 (!%p466_p9), %v618_v38, %v616_v37  ;;  %v1451_v26 = vshrl.u32 (!%p466_p9), %v1450_v25, 7  ;;  %s3071_s27 = sshll.u32 (!%p466_p9), %s513_s29, 4  ;;  %s5785_s27 = int_to_ptr.vmem [resolvable:$true] %s3071_s27 }
  0x1a   : > { %3514 = vmatprep.mubr.msk.f32.mxu1 (!%p466_p9), %vm525_vm0, %v523_v0  ;;  %v3136_v10 = vld [vmem:[%s5854_s1 + $0x18] sm:$0x1f] (!%p466_p9)  ;;  %v3156_v11 = vld [vmem:[%s5854_s1 + $0x20] sm:$0xff] (!%p466_p9)  ;;  %v3157_v12 = vld [vmem:[%s5854_s1 + $0x28] sm:$0x1f] (!%p466_p9) }
  0x1b   : > { %s515_s20 = scalar_select %p514_p10, %s4338_s25, 1  ;;  %v3173_v13 = vld [vmem:[%s5854_s1 + $0x30] sm:$0xff]  ;;  %v3174_v14 = vld [vmem:[%s5854_s1 + $0x38] sm:$0x1f]  ;;  %v3190_v15 = vld [vmem:[%s5854_s1 + $0x40] sm:$0xff]  ;;  %v4598_v27 = vsub.s32 0, %v1451_v26 }
  0x1c   : > { %v3191_v16 = vld [vmem:[%s5854_s1 + $0x48] sm:$0x1f]  ;;  %3625 = vmatpush1.bf16.msk.msra.mxu0 %vm4376_vm3, %v3623_v28  ;;  %v617_v43 = vld [vmem:[%s5827_s2 + $0x30] sm:$0x3f]  ;;  %v3164_v46 = vld [vmem:[%s5827_s2 + $0x98] sm:$0xff]  ;;  %v4603_v7 = vsub.s32 1, %v1451_v26 }
  0x1d   : > { %s3423_s26 = sshll.u32 %s515_s20, 5  ;;  %3627 = vmatprep.subr.bf16.mxu0 %v3626_v31  ;;  %v3162_v45 = vld [vmem:[%s5827_s2 + $0x88] sm:$0xff]  ;;  %v3633_v47 = vpack.c.bf16 %v617_v43, %v615_v42  ;;  %v3161_v49 = vld [vmem:[%s5827_s2 + $0x80] sm:$0xff]  ;;  %v3163_v50 = vld [vmem:[%s5827_s2 + $0x90] sm:$0xff]  ;;  %s4163_s1 = scalar_lea.vmem %s5785_s27, 16 }
  0x1e   : > { %s518_s23 = scalar_lea.vmem %s5855_s30, %s3423_s26  ;;  %v3646_v48 = vpack.c.bf16 %v3164_v46, %v3162_v45  ;;  %v3166_v51 = vld [vmem:[%s5827_s2 + $0xa8] sm:$0xff]  ;;  %v3168_v52 = vld [vmem:[%s5827_s2 + $0xb8] sm:$0x3f]  ;;  %v3648_v53 = vpack.c.bf16 %v3163_v50, %v3161_v49  ;;  %v3165_v56 = vld [vmem:[%s5827_s2 + $0xa0] sm:$0xff]  ;;  %p4164_p11 = scmp.ne.s32.totalorder %s5785_s27, %s4163_s1 }
  0x1f   : > { %v519_v1 = vld [vmem:[%s518_s23] sm:$0xff]  ;;  %v520_v2 = vld [vmem:[%s518_s23 + $0x8] sm:$0xff]  ;;  %v521_v3 = vld [vmem:[%s518_s23 + $0x10] sm:$0xff]  ;;  %v3650_v54 = vpack.c.bf16 %v3168_v52, %v3166_v51  ;;  %s4231_s25 = smov [#allocation2]  }
  0x20   : > { %v3596_v4 = vpack.c.bf16 %v520_v2, %v519_v1  ;;  %v522_v5 = vld [vmem:[%s518_s23 + $0x18] sm:$0x3f]  ;;  %v3167_v57 = vld [vmem:[%s5827_s2 + $0xb0] sm:$0x3f]  ;;  %v3179_v59 = vld [vmem:[%s5827_s2 + $0xc8] sm:$0xff]  ;;  %s3059_s23 = scalar_lea.sflag [#allocation3], %s512_s19  ;;  %p4165_p12 = pnand %p4164_p11, %p4355_p5 }
  0x21   : > { %v3600_v6 = vpack.c.bf16 %v522_v5, %v521_v3  ;;  %v3181_v60 = vld [vmem:[%s5827_s2 + $0xd8] sm:$0xff]  ;;  %v3653_v61 = vpack.c.bf16 %v3167_v57, %v3165_v56  ;;  %v3178_v63 = vld [vmem:[%s5827_s2 + $0xc0] sm:$0xff]  ;;  %v3180_v0 = vld [vmem:[%s5827_s2 + $0xd0] sm:$0xff]  ;;  %s4167_s20 = sshll.u32 %s4231_s25, 4  ;;  %s4168_s20 = int_to_ptr.vmem [resolvable:$false] %s4167_s20 }
  0x22   : > { %3597 = vmatprep.subr.bf16.mxu1 %v3596_v4  ;;  %v3666_v62 = vpack.c.bf16 %v3181_v60, %v3179_v59  ;;  %v3183_v1 = vld [vmem:[%s5827_s2 + $0xe8] sm:$0xff]  ;;  %v3185_v2 = vld [vmem:[%s5827_s2 + $0xf8] sm:$0x3f]  ;;  %v3668_v3 = vpack.c.bf16 %v3180_v0, %v3178_v63  ;;  %v3199_v21 = vld [vmem:[%s5827_s2 + $0x120] sm:$0xff]  ;;  %p4166_p13 = pneg %p4165_p12  ;;  %s4169_s26 = scalar_lea.vmem %s4168_s20, 32 }
  0x23   : > { %3599 = vmatpush3.bf16.msra.mxu1 %v3596_v4  ;;  %v3202_v17 = vld [vmem:[%s5827_s2 + $0x138] sm:$0x3f]  ;;  %v3201_v22 = vld [vmem:[%s5827_s2 + $0x130] sm:$0x3f]  ;;  %v1448_v28 = vld [vmem:[%s5828_s3] sm:$0x3]  ;;  %p4170_p0 = scmp.lt.s32.totalorder %s5785_s27, %s4168_s20  ;;  %p4171_p1 = scmp.lt.s32.totalorder %s4169_s26, %s4163_s1 }
  0x24   : > { %3602 = vmatprep.subr.msk.bf16.mxu1 %vm4376_vm3, %v3600_v6  ;;  %v3693_v24 = vpack.c.bf16 %v3201_v22, %v3199_v21  ;;  %v1453_v29 = vrot.slane %v1448_v28, %v4598_v27  ;;  %v1457_v31 = vrot.slane %v1448_v28, %v4603_v7  ;;  %vm4608_vm5 = vmpackc.low %vm1473_vm4, %vm4227_vm2  ;;  %v1468_v49 = vld [vmem:[%s5829_s4] sm:$0x3f]  ;;  %v3268_v50 = vld [vmem:[%s5829_s4 + $0x10] sm:$0x3f] }
  0x25   : > { %v3214_v52 = vld [vmem:[%s5830_s5 + $0x1a0] sm:$0xff]  ;;  %v3210_v56 = vld [vmem:[%s5829_s4 + $0x8] sm:$0x3f]  ;;  %v3220_v60 = vld [vmem:[%s5830_s5 + $0x1d0] sm:$0xff]  ;;  %p4172_p2 = por %p4171_p1, %p4170_p0 }
  0x26   : > { %v3218_v59 = vld [vmem:[%s5830_s5 + $0x1c0] sm:$0xff]  ;;  %v3236_v21 = vld [vmem:[%s5830_s5 + $0x250] sm:$0xff]  ;;  %v3239_v22 = vld [vmem:[%s5830_s5 + $0x268] sm:$0xff] }
  0x27   : > { %3605 = vmatpush3.bf16.msk.msra.mxu1 %vm4376_vm3, %v3600_v6  ;;  %v3714_v63 = vpack.c.bf16 %v3220_v60, %v3218_v59  ;;  %v3238_v26 = vld [vmem:[%s5830_s5 + $0x260] sm:$0xff]  ;;  %v3240_v28 = vld [vmem:[%s5830_s5 + $0x270] sm:$0xff]  ;;  %p4173_p3 = pnand %p4172_p2, %p4166_p13 }
  0x28   : > { %3607 = vmatprep.subr.bf16.mxu1 %v3596_v4  ;;  %v3260_v59 = vld [vmem:[%s5830_s5 + $0x310] sm:$0xff] }
  0x2a   : > { %3515 = vmatmul.mubr.msk.f32.vlgmr.msra.gmra.mrb[0].mxu1 %vm525_vm0, %v524_v8  ;;  %v3184_v8 = vld [vmem:[%s5827_s2 + $0xf0] sm:$0x3f] }
  0x2b   : > { %3609 = vmatpush3.bf16.msra.mxu1 %v3596_v4  ;;  %3525 = vmatprep.mubr.msk.f32.mxu1 %vm525_vm0, %v3135_v9 }
  0x2c   : > { %3612 = vmatprep.subr.msk.bf16.mxu1 %vm4376_vm3, %v3600_v6 }
  0x2f   : > { %3615 = vmatpush3.bf16.msk.msra.mxu1 %vm4376_vm3, %v3600_v6 }
  0x30   : > { %3637 = vmatprep.subr.bf16.mxu1 %v3596_v4 }
  0x32   : > { %3526 = vmatmul.mubr.msk.f32.vlgmr.msra.gmra.mrb[2].mxu1 %vm525_vm0, %v3136_v10  ;;  %v3196_v10 = vld [vmem:[%s5827_s2 + $0x108] sm:$0xff] }
  0x33   : > { %3639 = vmatpush3.bf16.msra.mxu1 %v3596_v4  ;;  %3536 = vmatprep.mubr.msk.f32.mxu1 %vm525_vm0, %v3156_v11  ;;  %v3198_v11 = vld [vmem:[%s5827_s2 + $0x118] sm:$0xff] }
  0x34   : > { %3642 = vmatprep.subr.msk.bf16.mxu1 %vm4376_vm3, %v3600_v6 }
  0x37   : > { %3645 = vmatpush3.bf16.msk.msra.mxu1 %vm4376_vm3, %v3600_v6 }
  0x38   : > { %3657 = vmatprep.subr.bf16.mxu1 %v3596_v4 }
  0x3a   : > { %3537 = vmatmul.mubr.msk.f32.vlgmr.msra.gmra.mrb[4].mxu1 %vm525_vm0, %v3157_v12 }
  0x3b   : > { %3659 = vmatpush3.bf16.msra.mxu1 %v3596_v4  ;;  %3547 = vmatprep.mubr.msk.f32.mxu1 %vm525_vm0, %v3173_v13  ;;  %v3686_v13 = vpack.c.bf16 %v3198_v11, %v3196_v10  ;;  %v3231_v10 = vld [vmem:[%s5830_s5 + $0x228] sm:$0xff]  ;;  %v3233_v11 = vld [vmem:[%s5830_s5 + $0x238] sm:$0xff] }
  0x3c   : > { %3662 = vmatprep.subr.msk.bf16.mxu1 %vm4376_vm3, %v3600_v6 }
  0x3f   : > { %3665 = vmatpush3.bf16.msk.msra.mxu1 %vm4376_vm3, %v3600_v6 }
  0x40   : > { %3677 = vmatprep.subr.bf16.mxu1 %v3596_v4 }
  0x42   : > { %3548 = vmatmul.mubr.msk.f32.vlgmr.msra.gmra.mrb[6].mxu1 %vm525_vm0, %v3174_v14  ;;  %v3195_v14 = vld [vmem:[%s5827_s2 + $0x100] sm:$0xff] }
  0x43   : > { %3679 = vmatpush3.bf16.msra.mxu1 %v3596_v4  ;;  %3558 = vmatprep.mubr.msk.f32.mxu1 %vm525_vm0, %v3190_v15  ;;  %v3670_v4 = vpack.c.bf16 %v3185_v2, %v3183_v1  ;;  %v3197_v15 = vld [vmem:[%s5827_s2 + $0x110] sm:$0xff]  ;;  %v3222_v1 = vld [vmem:[%s5830_s5 + $0x1e0] sm:$0xff] }
  0x44   : > { %3682 = vmatprep.subr.msk.bf16.mxu1 %vm4376_vm3, %v3600_v6  ;;  %v3688_v18 = vpack.c.bf16 %v3197_v15, %v3195_v14  ;;  %v3224_v2 = vld [vmem:[%s5830_s5 + $0x1f0] sm:$0xff]  ;;  %v3230_v14 = vld [vmem:[%s5830_s5 + $0x220] sm:$0xff] }
  0x45   : > { %v3232_v15 = vld [vmem:[%s5830_s5 + $0x230] sm:$0xff] }
  0x47   : > { %3685 = vmatpush3.bf16.msk.msra.mxu1 %vm4376_vm3, %v3600_v6  ;;  %v3182_v6 = vld [vmem:[%s5827_s2 + $0xe0] sm:$0xff] }
  0x48   : > { %v3673_v12 = vpack.c.bf16 %v3184_v8, %v3182_v6  ;;  %v3226_v8 = vld [vmem:[%s5830_s5 + $0x200] sm:$0xff] }
  0x4a   : > { %3559 = vmatmul.mubr.msk.f32.vlgmr.msra.gmra.mrb[8].mxu1 %vm525_vm0, %v3191_v16  ;;  %v3200_v16 = vld [vmem:[%s5827_s2 + $0x128] sm:$0xff] }
  0x4b   : > { %1544 = vmatprep.mubr.f32.mxu1 %v4228_v32  ;;  %v3690_v19 = vpack.c.bf16 %v3202_v17, %v3200_v16  ;;  %v3235_v16 = vld [vmem:[%s5830_s5 + $0x248] sm:$0xff]  ;;  %v3237_v17 = vld [vmem:[%s5830_s5 + $0x258] sm:$0xff] }
  0xfd   : > { %v3516_v33 = vpop.f32.mrb[0].mxu1 }
  0xfe   : > { %v602_v34 = vpop.f32.mrb[1].mxu1 }
 0x105   : > { %v3527_v40 = vpop.f32.mrb[2].mxu1 }
 0x106   : > { %v694_v44 = vpop.f32.mrb[3].mxu1 }
 0x107   : > { %3150 = vmatmul.mubr.msk.f32.vlgmr.msra.gmra.mrb[0].mxu0 %vm525_vm0, %v694_v44 }
 0x108   : > { %3629 = vmatpush1.bf16.msra.mxu0 %v3628_v39  ;;  %794 = vmatprep.mubr.f32.mxu0 %v4228_v32 }
 0x109   : > { %3632 = vmatprep.subr.msk.bf16.mxu0 %vm4376_vm3, %v3630_v41 }
 0x10b   : > { %3151 = vmatmul.mubr.msk.f32.gmra.mrb[2].mxu0 %vm525_vm0, %v3527_v40 }
 0x10c   : > { %3635 = vmatpush1.bf16.msk.msra.mxu0 %vm4376_vm3, %v3633_v47  ;;  %877 = vmatprep.mubr.f32.mxu0 %v4228_v32  ;;  %v3215_v47 = vld [vmem:[%s5830_s5 + $0x1a8] sm:$0xff] }
 0x10d   : > { %3647 = vmatprep.subr.bf16.mxu0 %v3646_v48  ;;  %v3538_v55 = vpop.f32.mrb[4].mxu1  ;;  %v3217_v48 = vld [vmem:[%s5830_s5 + $0x1b8] sm:$0xff] }
 0x10e   : > { %v965_v58 = vpop.f32.mrb[5].mxu1  ;;  %v3708_v51 = vpack.c.bf16 %v3217_v48, %v3215_v47  ;;  %v3252_v47 = vld [vmem:[%s5830_s5 + $0x2d0] sm:$0xff]  ;;  %v3255_v48 = vld [vmem:[%s5830_s5 + $0x2e8] sm:$0xff] }
 0x10f   : > { %3154 = vmatmul.mubr.msk.f32.vlgmr.msra.gmra.mrb[0].mxu0 %vm525_vm0, %v602_v34 }
 0x110   : > { %3649 = vmatpush1.bf16.msra.mxu0 %v3648_v53  ;;  %883 = vmatprep.mubr.f32.mxu0 %v4228_v32  ;;  %v3216_v53 = vld [vmem:[%s5830_s5 + $0x1b0] sm:$0xff] }
 0x111   : > { %3652 = vmatprep.subr.msk.bf16.mxu0 %vm4376_vm3, %v3650_v54  ;;  %v3219_v54 = vld [vmem:[%s5830_s5 + $0x1c8] sm:$0xff]  ;;  %v3710_v57 = vpack.c.bf16 %v3216_v53, %v3214_v52  ;;  %v3254_v52 = vld [vmem:[%s5830_s5 + $0x2e0] sm:$0xff]  ;;  %v3256_v53 = vld [vmem:[%s5830_s5 + $0x2f0] sm:$0xff] }
 0x113   : > { %3155 = vmatmul.mubr.msk.f32.gmra.mrb[2].mxu0 %vm525_vm0, %v3516_v33 }
 0x114   : > { %3655 = vmatpush1.bf16.msk.msra.mxu0 %vm4376_vm3, %v3653_v61  ;;  %1059 = vmatprep.mubr.f32.mxu0 %v4228_v32  ;;  %v3223_v61 = vld [vmem:[%s5830_s5 + $0x1e8] sm:$0xff] }
 0x115   : > { %3667 = vmatprep.subr.bf16.mxu0 %v3666_v62  ;;  %v3549_v5 = vpop.f32.mrb[6].mxu1  ;;  %v3225_v62 = vld [vmem:[%s5830_s5 + $0x1f8] sm:$0xff] }
 0x116   : > { %v1151_v9 = vpop.f32.mrb[7].mxu1  ;;  %v3716_v0 = vpack.c.bf16 %v3225_v62, %v3223_v61  ;;  %v3263_v61 = vld [vmem:[%s5830_s5 + $0x328] sm:$0xff]  ;;  %v3265_v62 = vld [vmem:[%s5830_s5 + $0x338] sm:$0xff] }
 0x117   : > { %3171 = vmatmul.mubr.msk.f32.vlgmr.msra.gmra.mrb[0].mxu0 %vm525_vm0, %v965_v58 }
 0x118   : > { %3669 = vmatpush1.bf16.msra.mxu0 %v3668_v3  ;;  %1065 = vmatprep.mubr.f32.mxu0 %v4228_v32  ;;  %v3227_v3 = vld [vmem:[%s5830_s5 + $0x208] sm:$0xff] }
 0x119   : > { %3672 = vmatprep.subr.msk.bf16.mxu0 %vm4376_vm3, %v3670_v4  ;;  %v3229_v4 = vld [vmem:[%s5830_s5 + $0x218] sm:$0xff] }
 0x11a   : > { %v3720_v6 = vpack.c.bf16 %v3229_v4, %v3227_v3  ;;  %v1552_v3 = vld [vmem:[%s5830_s5 + $0x8] sm:$0xff]  ;;  %v1554_v4 = vld [vmem:[%s5830_s5 + $0x18] sm:$0xff] }
 0x11b   : > { %3172 = vmatmul.mubr.msk.f32.gmra.mrb[2].mxu0 %vm525_vm0, %v3538_v55  ;;  %v3221_v55 = vld [vmem:[%s5830_s5 + $0x1d8] sm:$0xff] }
 0x11c   : > { %3675 = vmatpush1.bf16.msk.msra.mxu0 %vm4376_vm3, %v3673_v12  ;;  %1245 = vmatprep.mubr.f32.mxu0 %v4228_v32  ;;  %v3712_v58 = vpack.c.bf16 %v3221_v55, %v3219_v54  ;;  %v3259_v54 = vld [vmem:[%s5830_s5 + $0x308] sm:$0xff]  ;;  %v3261_v55 = vld [vmem:[%s5830_s5 + $0x318] sm:$0xff] }
 0x11d   : > { %3687 = vmatprep.subr.bf16.mxu0 %v3686_v13  ;;  %v3560_v20 = vpop.f32.mrb[8].mxu1  ;;  %v3724_v13 = vpack.c.bf16 %v3233_v11, %v3231_v10  ;;  %v1551_v10 = vld [vmem:[%s5830_s5] sm:$0xff]  ;;  %v1553_v11 = vld [vmem:[%s5830_s5 + $0x10] sm:$0xff] }
 0x11e   : > { %v1337_v23 = vpop.f32.mrb[9].mxu1 }
 0x11f   : > { %3188 = vmatmul.mubr.msk.f32.vlgmr.msra.gmra.mrb[0].mxu0 %vm525_vm0, %v1151_v9  ;;  %v3228_v9 = vld [vmem:[%s5830_s5 + $0x210] sm:$0xff] }
 0x120   : > { %3689 = vmatpush1.bf16.msra.mxu0 %v3688_v18  ;;  %1251 = vmatprep.mubr.f32.mxu0 %v4228_v32  ;;  %v3722_v12 = vpack.c.bf16 %v3228_v9, %v3226_v8  ;;  %v3726_v18 = vpack.c.bf16 %v3232_v15, %v3230_v14  ;;  %v1558_v14 = vld [vmem:[%s5830_s5 + $0x38] sm:$0xff] }
 0x121   : > { %3692 = vmatprep.subr.msk.bf16.mxu0 %vm4376_vm3, %v3690_v19  ;;  %v3728_v19 = vpack.c.bf16 %v3237_v17, %v3235_v16  ;;  %v3762_v16 = vpack.c.bf16 %v1553_v11, %v1551_v10  ;;  %v1592_v10 = vld [vmem:[%s5830_s5 + $0x148] sm:$0xff]  ;;  %v1594_v11 = vld [vmem:[%s5830_s5 + $0x158] sm:$0xff] }
 0x123   : > { %3189 = vmatmul.mubr.msk.f32.gmra.mrb[2].mxu0 %vm525_vm0, %v3549_v5  ;;  %v3718_v5 = vpack.c.bf16 %v3224_v2, %v3222_v1  ;;  %v3264_v1 = vld [vmem:[%s5830_s5 + $0x330] sm:$0xff] }
 0x124   : > { %3695 = vmatpush1.bf16.msk.msra.mxu0 %vm4376_vm3, %v3693_v24  ;;  %1431 = vmatprep.mubr.f32.mxu0 %v4228_v32 }
 0x127   : > { %3205 = vmatmul.mubr.msk.f32.vlgmr.msra.gmra.mrb[0].mxu0 %vm525_vm0, %v1337_v23  ;;  %v3241_v23 = vld [vmem:[%s5830_s5 + $0x278] sm:$0xff] }
 0x128   : > { %1437 = vmatprep.mubr.f32.mxu0 %v4228_v32  ;;  %v3732_v25 = vpack.c.bf16 %v3241_v23, %v3239_v22  ;;  %v1562_v22 = vld [vmem:[%s5830_s5 + $0x58] sm:$0xff] }
 0x12b   : > { %3206 = vmatmul.mubr.msk.f32.gmra.mrb[2].mxu0 %vm525_vm0, %v3560_v20  ;;  %v3234_v20 = vld [vmem:[%s5830_s5 + $0x240] sm:$0xff] }
 0x12c   : > { %1950 = vmatprep.mubr.f32.mxu0 %v4228_v32  ;;  %v3730_v24 = vpack.c.bf16 %v3236_v21, %v3234_v20  ;;  %v1557_v20 = vld [vmem:[%s5830_s5 + $0x30] sm:$0xff]  ;;  %v1560_v21 = vld [vmem:[%s5830_s5 + $0x48] sm:$0xff] }
 0x1fa   : > { %v1433_v30 = vpop.f32.mrb[0].mxu0 }
 0x1fb   : > { %v1435_v33 = vpop.f32.mrb[1].mxu0  ;;  %v1460_v34 = vadd.f32 %v1453_v29, %v1433_v30  ;;  %v3245_v30 = vld [vmem:[%s5830_s5 + $0x298] sm:$0xff] }
 0x1fc   : > { %v1461_v35 = vadd.f32 %v1457_v31, %v1435_v33 }
 0x1fd   : > { %v1464_v40 = vmax.f32 %v1460_v34, 0.0  ;;  %v3242_v34 = vld [vmem:[%s5830_s5 + $0x280] sm:$0xff] }
 0x1fe   : > { %v1439_v36 = vpop.f32.mrb[2].mxu0  ;;  %v1465_v42 = vmax.f32 %v1461_v35, 0.0  ;;  %v3244_v35 = vld [vmem:[%s5830_s5 + $0x290] sm:$0xff] }
 0x1ff   : > { %v1462_v37 = vadd.f32 %v1453_v29, %v1439_v36  ;;  %v1441_v38 = vpop.f32.mrb[3].mxu0  ;;  %v3243_v29 = vld [vmem:[%s5830_s5 + $0x288] sm:$0xff] }
 0x200   : > { %v1463_v39 = vadd.f32 %v1457_v31, %v1441_v38  ;;  %v3734_v31 = vpack.c.bf16 %v3240_v28, %v3238_v26  ;;  %v3736_v33 = vpack.c.bf16 %v3245_v30, %v3243_v29  ;;  %v3247_v36 = vld [vmem:[%s5830_s5 + $0x2a8] sm:$0xff]  ;;  %v3738_v38 = vpack.c.bf16 %v3244_v35, %v3242_v34  ;;  %v1561_v26 = vld [vmem:[%s5830_s5 + $0x50] sm:$0xff]  ;;  %v1566_v29 = vld [vmem:[%s5830_s5 + $0x78] sm:$0xff] }
 0x201   : > { %v1466_v41 = vmax.f32 %v1462_v37, 0.0  ;;  %v3249_v37 = vld [vmem:[%s5830_s5 + $0x2b8] sm:$0xff]  ;;  %v1564_v28 = vld [vmem:[%s5830_s5 + $0x68] sm:$0xff]  ;;  %v1565_v34 = vld [vmem:[%s5830_s5 + $0x70] sm:$0xff] }
 0x202   : > { %v1467_v43 = vmax.f32 %v1463_v39, 0.0  ;;  %v3740_v39 = vpack.c.bf16 %v3249_v37, %v3247_v36  ;;  %v1568_v35 = vld [vmem:[%s5830_s5 + $0x88] sm:$0xff]  ;;  %v1570_v36 = vld [vmem:[%s5830_s5 + $0x98] sm:$0xff] }
 0x203   : > { %v3699_v44 = vpack.c.bf16 %v1466_v41, %v1464_v40  ;;  %v3246_v40 = vld [vmem:[%s5830_s5 + $0x2a0] sm:$0xff]  ;;  %v3248_v41 = vld [vmem:[%s5830_s5 + $0x2b0] sm:$0xff] }
 0x204   : > { %v3696_v46 = vpack.c.bf16 %v1467_v43, %v1465_v42  ;;  %v3251_v42 = vld [vmem:[%s5830_s5 + $0x2c8] sm:$0xff]  ;;  %v3253_v43 = vld [vmem:[%s5830_s5 + $0x2d8] sm:$0xff] }
 0x205   : > { %v3744_v45 = vpack.c.bf16 %v3253_v43, %v3251_v42  ;;  %v1574_v42 = vld [vmem:[%s5830_s5 + $0xb8] sm:$0xff] }
 0x206   : > { %3698 = vmatprep.subr.msk.bf16.mxu1 %vm4608_vm5, %v3696_v46  ;;  %3814 = vmatprep.subr.msk.bf16.mxu0 %vm4608_vm5, %v3696_v46 }
 0x207   : > { %3701 = vmatpush1.bf16.msk.msra.mxu1 %vm4608_vm5, %v3699_v44  ;;  %3817 = vmatpush1.bf16.msk.msra.mxu0 %vm4608_vm5, %v3699_v44 }
 0x208   : > { %3704 = vmatprep.subr.msk.bf16.mxu1 %vm4608_vm5, %v3696_v46  ;;  %v3250_v46 = vld [vmem:[%s5830_s5 + $0x2c0] sm:$0xff] }
 0x20a   : > { %3209 = vmatmul.mubr.msk.f32.vlgmr.msra.gmra.mrb[10].mxu1 %vm1469_vm6, %v1468_v49  ;;  %3271 = vmatmul.mubr.msk.f32.vlgmr.msra.gmra.mrb[4].mxu0 %vm1469_vm6, %v3268_v50  ;;  %v3257_v49 = vld [vmem:[%s5830_s5 + $0x2f8] sm:$0xff]  ;;  %v3746_v50 = vpack.c.bf16 %v3252_v47, %v3250_v46  ;;  %v1573_v46 = vld [vmem:[%s5830_s5 + $0xb0] sm:$0xff]  ;;  %v1576_v47 = vld [vmem:[%s5830_s5 + $0xc8] sm:$0xff] }
 0x20b   : > { %3707 = vmatpush1.bf16.msk.msra.mxu1 %vm4608_vm5, %v3699_v44  ;;  %1672 = vmatprep.mubr.f32.mxu1 %v4228_v32  ;;  %v3742_v44 = vpack.c.bf16 %v3248_v41, %v3246_v40  ;;  %v1569_v40 = vld [vmem:[%s5830_s5 + $0x90] sm:$0xff]  ;;  %v1572_v41 = vld [vmem:[%s5830_s5 + $0xa8] sm:$0xff] }
 0x20c   : > { %3709 = vmatprep.subr.bf16.mxu1 %v3708_v51  ;;  %2177 = vmatprep.mubr.f32.mxu0 %v4228_v32  ;;  %v3748_v51 = vpack.c.bf16 %v3257_v49, %v3255_v48  ;;  %v1578_v48 = vld [vmem:[%s5830_s5 + $0xd8] sm:$0xff] }
 0x20e   : > { %3213 = vmatmul.mubr.msk.f32.vlgmr.msra.gmra.mrb[12].mxu1 %vm1469_vm6, %v3210_v56  ;;  %v3750_v56 = vpack.c.bf16 %v3256_v53, %v3254_v52  ;;  %v1577_v52 = vld [vmem:[%s5830_s5 + $0xd0] sm:$0xff]  ;;  %v1580_v53 = vld [vmem:[%s5830_s5 + $0xe8] sm:$0xff] }
 0x20f   : > { %3711 = vmatpush1.bf16.msra.mxu1 %v3710_v57  ;;  %v3752_v57 = vpack.c.bf16 %v3261_v55, %v3259_v54  ;;  %v1582_v54 = vld [vmem:[%s5830_s5 + $0xf8] sm:$0xff] }
 0x210   : > { %3713 = vmatprep.subr.bf16.mxu1 %v3712_v58  ;;  %v3258_v58 = vld [vmem:[%s5830_s5 + $0x300] sm:$0xff] }
 0x211   : > { %v3754_v60 = vpack.c.bf16 %v3260_v59, %v3258_v58  ;;  %v1581_v58 = vld [vmem:[%s5830_s5 + $0xf0] sm:$0xff]  ;;  %v1584_v59 = vld [vmem:[%s5830_s5 + $0x108] sm:$0xff] }
 0x213   : > { %3715 = vmatpush1.bf16.msra.mxu1 %v3714_v63  ;;  %v3756_v63 = vpack.c.bf16 %v3265_v62, %v3263_v61 }
 0x214   : > { %3717 = vmatprep.subr.bf16.mxu1 %v3716_v0  ;;  %v3262_v0 = vld [vmem:[%s5830_s5 + $0x320] sm:$0xff] }
 0x215   : > { %v3758_v2 = vpack.c.bf16 %v3264_v1, %v3262_v0  ;;  %v1585_v0 = vld [vmem:[%s5830_s5 + $0x110] sm:$0xff]  ;;  %v1588_v1 = vld [vmem:[%s5830_s5 + $0x128] sm:$0xff] }
 0x217   : > { %3719 = vmatpush1.bf16.msra.mxu1 %v3718_v5  ;;  %v3760_v5 = vpack.c.bf16 %v1554_v4, %v1552_v3 }
 0x218   : > { %3721 = vmatprep.subr.bf16.mxu1 %v3720_v6 }
 0x21b   : > { %3723 = vmatpush1.bf16.msra.mxu1 %v3722_v12 }
 0x21c   : > { %3725 = vmatprep.subr.bf16.mxu1 %v3724_v13  ;;  %v1556_v13 = vld [vmem:[%s5830_s5 + $0x28] sm:$0xff] }
 0x21f   : > { %3727 = vmatpush1.bf16.msra.mxu1 %v3726_v18  ;;  %v3764_v18 = vpack.c.bf16 %v1558_v14, %v1556_v13  ;;  %v3800_v14 = vpack.c.bf16 %v1594_v11, %v1592_v10  ;;  %v3301_v10 = vld [vmem:[%s5830_s5 + $0x428] sm:$0xff]  ;;  %v3303_v11 = vld [vmem:[%s5830_s5 + $0x438] sm:$0xff] }
 0x220   : > { %3729 = vmatprep.subr.bf16.mxu1 %v3728_v19  ;;  %v1555_v19 = vld [vmem:[%s5830_s5 + $0x20] sm:$0xff] }
 0x221   : > { %v3766_v23 = vpack.c.bf16 %v1557_v20, %v1555_v19 }
 0x223   : > { %3731 = vmatpush1.bf16.msra.mxu1 %v3730_v24  ;;  %v3768_v24 = vpack.c.bf16 %v1562_v22, %v1560_v21  ;;  %v1595_v21 = vld [vmem:[%s5830_s5 + $0x160] sm:$0xff]  ;;  %v1597_v22 = vld [vmem:[%s5830_s5 + $0x170] sm:$0xff] }
 0x224   : > { %3733 = vmatprep.subr.bf16.mxu1 %v3732_v25  ;;  %v1559_v25 = vld [vmem:[%s5830_s5 + $0x40] sm:$0xff] }
 0x225   : > { %v3770_v30 = vpack.c.bf16 %v1561_v26, %v1559_v25  ;;  %v3806_v25 = vpack.c.bf16 %v1597_v22, %v1595_v21  ;;  %v3304_v21 = vld [vmem:[%s5830_s5 + $0x440] sm:$0xff]  ;;  %v3306_v22 = vld [vmem:[%s5830_s5 + $0x450] sm:$0xff] }
 0x227   : > { %3735 = vmatpush1.bf16.msra.mxu1 %v3734_v31  ;;  %v3772_v31 = vpack.c.bf16 %v1566_v29, %v1564_v28  ;;  %v1599_v28 = vld [vmem:[%s5830_s5 + $0x180] sm:$0xff]  ;;  %v1601_v29 = vld [vmem:[%s5830_s5 + $0x190] sm:$0xff] }
 0x228   : > { %3737 = vmatprep.subr.bf16.mxu1 %v3736_v33  ;;  %v1563_v33 = vld [vmem:[%s5830_s5 + $0x60] sm:$0xff] }
 0x229   : > { %v3774_v37 = vpack.c.bf16 %v1565_v34, %v1563_v33  ;;  %v3810_v33 = vpack.c.bf16 %v1601_v29, %v1599_v28  ;;  %v3308_v28 = vld [vmem:[%s5830_s5 + $0x460] sm:$0xff]  ;;  %v3310_v29 = vld [vmem:[%s5830_s5 + $0x470] sm:$0xff] }
 0x22b   : > { %3739 = vmatpush1.bf16.msra.mxu1 %v3738_v38  ;;  %v3776_v38 = vpack.c.bf16 %v1570_v36, %v1568_v35  ;;  %v3272_v35 = vld [vmem:[%s5830_s5 + $0x340] sm:$0xff]  ;;  %v3274_v36 = vld [vmem:[%s5830_s5 + $0x350] sm:$0xff] }
 0x22c   : > { %3741 = vmatprep.subr.bf16.mxu1 %v3740_v39  ;;  %v1567_v39 = vld [vmem:[%s5830_s5 + $0x80] sm:$0xff] }
 0x22d   : > { %v3778_v43 = vpack.c.bf16 %v1569_v40, %v1567_v39  ;;  %v3820_v39 = vpack.c.bf16 %v3274_v36, %v3272_v35  ;;  %v3312_v35 = vld [vmem:[%s5830_s5 + $0x480] sm:$0xff]  ;;  %v3314_v36 = vld [vmem:[%s5830_s5 + $0x490] sm:$0xff] }
 0x22f   : > { %3743 = vmatpush1.bf16.msra.mxu1 %v3742_v44  ;;  %v3780_v44 = vpack.c.bf16 %v1574_v42, %v1572_v41  ;;  %v3276_v41 = vld [vmem:[%s5830_s5 + $0x360] sm:$0xff]  ;;  %v3278_v42 = vld [vmem:[%s5830_s5 + $0x370] sm:$0xff] }
 0x230   : > { %3745 = vmatprep.subr.bf16.mxu1 %v3744_v45  ;;  %v1571_v45 = vld [vmem:[%s5830_s5 + $0xa0] sm:$0xff] }
 0x231   : > { %v3782_v49 = vpack.c.bf16 %v1573_v46, %v1571_v45  ;;  %v3824_v45 = vpack.c.bf16 %v3278_v42, %v3276_v41  ;;  %v3316_v41 = vld [vmem:[%s5830_s5 + $0x4a0] sm:$0xff]  ;;  %v3318_v42 = vld [vmem:[%s5830_s5 + $0x4b0] sm:$0xff] }
 0x233   : > { %3747 = vmatpush1.bf16.msra.mxu1 %v3746_v50  ;;  %v3784_v50 = vpack.c.bf16 %v1578_v48, %v1576_v47  ;;  %v3280_v47 = vld [vmem:[%s5830_s5 + $0x380] sm:$0xff]  ;;  %v3282_v48 = vld [vmem:[%s5830_s5 + $0x390] sm:$0xff] }
 0x234   : > { %3749 = vmatprep.subr.bf16.mxu1 %v3748_v51  ;;  %v1575_v51 = vld [vmem:[%s5830_s5 + $0xc0] sm:$0xff] }
 0x235   : > { %v3786_v55 = vpack.c.bf16 %v1577_v52, %v1575_v51  ;;  %v3284_v51 = vld [vmem:[%s5830_s5 + $0x3a0] sm:$0xff]  ;;  %v3286_v52 = vld [vmem:[%s5830_s5 + $0x3b0] sm:$0xff] }
 0x237   : > { %3751 = vmatpush1.bf16.msra.mxu1 %v3750_v56  ;;  %v3788_v56 = vpack.c.bf16 %v1582_v54, %v1580_v53  ;;  %v3289_v53 = vld [vmem:[%s5830_s5 + $0x3c8] sm:$0xff]  ;;  %v3291_v54 = vld [vmem:[%s5830_s5 + $0x3d8] sm:$0xff] }
 0x238   : > { %3753 = vmatprep.subr.bf16.mxu1 %v3752_v57  ;;  %v1579_v57 = vld [vmem:[%s5830_s5 + $0xe0] sm:$0xff] }
 0x239   : > { %v3790_v61 = vpack.c.bf16 %v1581_v58, %v1579_v57  ;;  %v3288_v57 = vld [vmem:[%s5830_s5 + $0x3c0] sm:$0xff]  ;;  %v3290_v58 = vld [vmem:[%s5830_s5 + $0x3d0] sm:$0xff] }
 0x23b   : > { %3755 = vmatpush1.bf16.msra.mxu1 %v3754_v60  ;;  %v1586_v60 = vld [vmem:[%s5830_s5 + $0x118] sm:$0xff] }
 0x23c   : > { %3757 = vmatprep.subr.bf16.mxu1 %v3756_v63  ;;  %v3792_v62 = vpack.c.bf16 %v1586_v60, %v1584_v59  ;;  %v1583_v63 = vld [vmem:[%s5830_s5 + $0x100] sm:$0xff]  ;;  %v3293_v59 = vld [vmem:[%s5830_s5 + $0x3e8] sm:$0xff]  ;;  %v3295_v60 = vld [vmem:[%s5830_s5 + $0x3f8] sm:$0xff] }
 0x23d   : > { %v3794_v3 = vpack.c.bf16 %v1585_v0, %v1583_v63  ;;  %v3292_v63 = vld [vmem:[%s5830_s5 + $0x3e0] sm:$0xff]  ;;  %v3294_v0 = vld [vmem:[%s5830_s5 + $0x3f0] sm:$0xff] }
 0x23f   : > { %3759 = vmatpush1.bf16.msra.mxu1 %v3758_v2  ;;  %v1590_v2 = vld [vmem:[%s5830_s5 + $0x138] sm:$0xff] }
 0x240   : > { %3761 = vmatprep.subr.bf16.mxu1 %v3760_v5  ;;  %v3796_v4 = vpack.c.bf16 %v1590_v2, %v1588_v1  ;;  %v1587_v5 = vld [vmem:[%s5830_s5 + $0x120] sm:$0xff]  ;;  %v3297_v1 = vld [vmem:[%s5830_s5 + $0x408] sm:$0xff]  ;;  %v3299_v2 = vld [vmem:[%s5830_s5 + $0x418] sm:$0xff] }
 0x2dd   : > { %v4800_v6 = vpop.f32.mrb[10].mxu1  ;;  %v4802_v8 = vpop.f32.mrb[4].mxu0 }
 0x2de   : > { %v1548_v9 = vpop.f32.mrb[11].mxu1  ;;  %v4810_v12 = vpop.f32.mrb[5].mxu0 }
 0x2e1   : > { %v1674_v15 = vpop.f32.mrb[12].mxu1 }
 0x2e2   : > { %v1676_v17 = vpop.f32.mrb[13].mxu1 }
 0x2e3   : > { %3266 = vmatprep.mubr.msk.f32.mxu1 %vm1732_vm7, %v1676_v17  ;;  %v1596_v17 = vld [vmem:[%s5830_s5 + $0x168] sm:$0xff] }
 0x2e4   : > { %1801 = vmatmul.mubr.f32.vlgmr.msra.gmra.mrb[14].mxu1 %v1674_v15  ;;  %v1591_v15 = vld [vmem:[%s5830_s5 + $0x140] sm:$0xff] }
 0x2e5   : > { %3763 = vmatpush1.bf16.msra.mxu1 %v3762_v16  ;;  %3267 = vmatprep.mubr.msk.f32.mxu1 %vm1732_vm7, %v1548_v9  ;;  %v1589_v9 = vld [vmem:[%s5830_s5 + $0x130] sm:$0xff] }
 0x2e6   : > { %3765 = vmatprep.subr.bf16.mxu1 %v3764_v18  ;;  %v3798_v13 = vpack.c.bf16 %v1589_v9, %v1587_v5  ;;  %v1593_v16 = vld [vmem:[%s5830_s5 + $0x150] sm:$0xff]  ;;  %v1598_v18 = vld [vmem:[%s5830_s5 + $0x178] sm:$0xff]  ;;  %v3296_v5 = vld [vmem:[%s5830_s5 + $0x400] sm:$0xff] }
 0x2e7   : > { %v3802_v19 = vpack.c.bf16 %v1593_v16, %v1591_v15  ;;  %v3804_v20 = vpack.c.bf16 %v1598_v18, %v1596_v17  ;;  %v3298_v9 = vld [vmem:[%s5830_s5 + $0x410] sm:$0xff]  ;;  %v3300_v15 = vld [vmem:[%s5830_s5 + $0x420] sm:$0xff]  ;;  %v3305_v17 = vld [vmem:[%s5830_s5 + $0x448] sm:$0xff] }
 0x2e8   : > { %v3302_v16 = vld [vmem:[%s5830_s5 + $0x430] sm:$0xff]  ;;  %v3307_v18 = vld [vmem:[%s5830_s5 + $0x458] sm:$0xff] }
 0x2e9   : > { %3767 = vmatpush1.bf16.msra.mxu1 %v3766_v23  ;;  %v1600_v23 = vld [vmem:[%s5830_s5 + $0x188] sm:$0xff] }
 0x2ea   : > { %3769 = vmatprep.subr.bf16.mxu1 %v3768_v24  ;;  %v1602_v24 = vld [vmem:[%s5830_s5 + $0x198] sm:$0xff] }
 0x2eb   : > { %v3808_v26 = vpack.c.bf16 %v1602_v24, %v1600_v23  ;;  %v3309_v23 = vld [vmem:[%s5830_s5 + $0x468] sm:$0xff]  ;;  %v3311_v24 = vld [vmem:[%s5830_s5 + $0x478] sm:$0xff] }
 0x2ed   : > { %3771 = vmatpush1.bf16.msra.mxu1 %v3770_v30  ;;  %v3273_v30 = vld [vmem:[%s5830_s5 + $0x348] sm:$0xff] }
 0x2ee   : > { %3773 = vmatprep.subr.bf16.mxu1 %v3772_v31  ;;  %v3275_v31 = vld [vmem:[%s5830_s5 + $0x358] sm:$0xff] }
 0x2ef   : > { %v3818_v34 = vpack.c.bf16 %v3275_v31, %v3273_v30  ;;  %v3313_v30 = vld [vmem:[%s5830_s5 + $0x488] sm:$0xff]  ;;  %v3315_v31 = vld [vmem:[%s5830_s5 + $0x498] sm:$0xff] }
 0x2f1   : > { %3775 = vmatpush1.bf16.msra.mxu1 %v3774_v37  ;;  %v3277_v37 = vld [vmem:[%s5830_s5 + $0x368] sm:$0xff] }
 0x2f2   : > { %3777 = vmatprep.subr.bf16.mxu1 %v3776_v38  ;;  %v3279_v38 = vld [vmem:[%s5830_s5 + $0x378] sm:$0xff] }
 0x2f3   : > { %v3822_v40 = vpack.c.bf16 %v3279_v38, %v3277_v37  ;;  %v3317_v37 = vld [vmem:[%s5830_s5 + $0x4a8] sm:$0xff]  ;;  %v3319_v38 = vld [vmem:[%s5830_s5 + $0x4b8] sm:$0xff] }
 0x2f5   : > { %3779 = vmatpush1.bf16.msra.mxu1 %v3778_v43  ;;  %v3281_v43 = vld [vmem:[%s5830_s5 + $0x388] sm:$0xff] }
 0x2f6   : > { %3781 = vmatprep.subr.bf16.mxu1 %v3780_v44  ;;  %v3283_v44 = vld [vmem:[%s5830_s5 + $0x398] sm:$0xff] }
 0x2f7   : > { %v3826_v46 = vpack.c.bf16 %v3283_v44, %v3281_v43  ;;  %v3321_v43 = vld [vmem:[%s5830_s5 + $0x4c8] sm:$0xff]  ;;  %v3323_v44 = vld [vmem:[%s5830_s5 + $0x4d8] sm:$0xff] }
 0x2f9   : > { %3783 = vmatpush1.bf16.msra.mxu1 %v3782_v49  ;;  %v3285_v49 = vld [vmem:[%s5830_s5 + $0x3a8] sm:$0xff] }
 0x2fa   : > { %3785 = vmatprep.subr.bf16.mxu1 %v3784_v50 }
 0x2fd   : > { %3787 = vmatpush1.bf16.msra.mxu1 %v3786_v55  ;;  %v3832_v55 = vpack.c.bf16 %v3286_v52, %v3284_v51 }
 0x2fe   : > { %3789 = vmatprep.subr.bf16.mxu1 %v3788_v56  ;;  %v3834_v56 = vpack.c.bf16 %v3291_v54, %v3289_v53 }
 0x301   : > { %3791 = vmatpush1.bf16.msra.mxu1 %v3790_v61  ;;  %v3836_v61 = vpack.c.bf16 %v3290_v58, %v3288_v57  ;;  %v3332_v57 = vld [vmem:[%s5833_s8 + $0xc0] sm:$0xff]  ;;  %v3333_v58 = vld [vmem:[%s5833_s8 + $0xc8] sm:$0xff] }
 0x302   : > { %3793 = vmatprep.subr.bf16.mxu1 %v3792_v62  ;;  %v3838_v62 = vpack.c.bf16 %v3295_v60, %v3293_v59  ;;  %v3328_v59 = vld [vmem:[%s5832_s7 + $0x2] sm:$0x3]  ;;  %v3871_v60 = vpack.c.bf16 %v3333_v58, %v3332_v57 }
 0x303   : > { %v2196_v58 = vld [vmem:[%s5833_s8 + $0x60] sm:$0xff] }
 0x305   : > { %3795 = vmatpush1.bf16.msra.mxu1 %v3794_v3  ;;  %v3840_v3 = vpack.c.bf16 %v3294_v0, %v3292_v63  ;;  %v3335_v63 = vld [vmem:[%s5833_s8 + $0xd8] sm:$0xff] }
 0x306   : > { %3797 = vmatprep.subr.bf16.mxu1 %v3796_v4  ;;  %v3842_v4 = vpack.c.bf16 %v3299_v2, %v3297_v1  ;;  %v3336_v1 = vld [vmem:[%s5833_s8 + $0xe0] sm:$0xff]  ;;  %v3337_v2 = vld [vmem:[%s5833_s8 + $0xe8] sm:$0xff] }
 0x309   : > { %3799 = vmatpush1.bf16.msra.mxu1 %v3798_v13  ;;  %v3844_v13 = vpack.c.bf16 %v3298_v9, %v3296_v5  ;;  %v3339_v5 = vld [vmem:[%s5833_s8 + $0xf8] sm:$0xff] }
 0x30a   : > { %3801 = vmatprep.subr.bf16.mxu1 %v3800_v14  ;;  %v3846_v14 = vpack.c.bf16 %v3303_v11, %v3301_v10  ;;  %v3340_v10 = vld [vmem:[%s5833_s8 + $0x100] sm:$0xff]  ;;  %v3341_v11 = vld [vmem:[%s5833_s8 + $0x108] sm:$0xff] }
 0x30d   : > { %3803 = vmatpush1.bf16.msra.mxu1 %v3802_v19  ;;  %v3848_v19 = vpack.c.bf16 %v3302_v16, %v3300_v15  ;;  %v3343_v15 = vld [vmem:[%s5833_s8 + $0x118] sm:$0xff] }
 0x30e   : > { %3805 = vmatprep.subr.bf16.mxu1 %v3804_v20  ;;  %v3850_v20 = vpack.c.bf16 %v3307_v18, %v3305_v17  ;;  %v3344_v17 = vld [vmem:[%s5833_s8 + $0x120] sm:$0xff]  ;;  %v3345_v18 = vld [vmem:[%s5833_s8 + $0x128] sm:$0xff] }
 0x311   : > { %3807 = vmatpush1.bf16.msra.mxu1 %v3806_v25  ;;  %v3852_v25 = vpack.c.bf16 %v3306_v22, %v3304_v21  ;;  %v3347_v21 = vld [vmem:[%s5833_s8 + $0x138] sm:$0xff] }
 0x312   : > { %3809 = vmatprep.subr.bf16.mxu1 %v3808_v26  ;;  %v3854_v26 = vpack.c.bf16 %v3311_v24, %v3309_v23  ;;  %v3348_v23 = vld [vmem:[%s5833_s8 + $0x140] sm:$0xff]  ;;  %v3349_v24 = vld [vmem:[%s5833_s8 + $0x148] sm:$0xff] }
 0x315   : > { %3811 = vmatpush1.bf16.msra.mxu1 %v3810_v33  ;;  %v3856_v33 = vpack.c.bf16 %v3310_v29, %v3308_v28  ;;  %v3351_v28 = vld [vmem:[%s5833_s8 + $0x158] sm:$0xff] }
 0x316   : > { %3819 = vmatprep.subr.bf16.mxu1 %v3818_v34  ;;  %v3858_v34 = vpack.c.bf16 %v3315_v31, %v3313_v30  ;;  %v3352_v30 = vld [vmem:[%s5833_s8 + $0x160] sm:$0xff]  ;;  %v3353_v31 = vld [vmem:[%s5833_s8 + $0x168] sm:$0xff] }
 0x318   : > { %1875 = vmatmul.mubr.f32.vlgmr.msra.gmra.mrb[14].mxu1 %v4800_v6  ;;  %v3287_v6 = vld [vmem:[%s5830_s5 + $0x3b8] sm:$0xff] }
 0x319   : > { %3821 = vmatpush1.bf16.msra.mxu1 %v3820_v39  ;;  %3324 = vmatprep.mubr.msk.f32.mxu1 %vm1732_vm7, %v4810_v12  ;;  %v3828_v12 = vpack.c.bf16 %v3282_v48, %v3280_v47  ;;  %v3830_v50 = vpack.c.bf16 %v3287_v6, %v3285_v49  ;;  %v3860_v39 = vpack.c.bf16 %v3314_v36, %v3312_v35  ;;  %v3320_v47 = vld [vmem:[%s5830_s5 + $0x4c0] sm:$0xff]  ;;  %v3322_v48 = vld [vmem:[%s5830_s5 + $0x4d0] sm:$0xff]  ;;  %v3355_v35 = vld [vmem:[%s5833_s8 + $0x178] sm:$0xff] }
 0x31a   : > { %3823 = vmatprep.subr.bf16.mxu1 %v3822_v40  ;;  %v3862_v40 = vpack.c.bf16 %v3319_v38, %v3317_v37  ;;  %v3868_v49 = vpack.c.bf16 %v3322_v48, %v3320_v47  ;;  %v2086_v6 = vld [vmem:[%s5831_s6] sm:$0x3]  ;;  %v2189_v48 = vld [vmem:[%s5833_s8 + $0x28] sm:$0xff] }
 0x31b   : > { %v2188_v47 = vld [vmem:[%s5833_s8 + $0x20] sm:$0xff] }
 0x31d   : > { %3825 = vmatpush1.bf16.msra.mxu1 %v3824_v45  ;;  %v3864_v45 = vpack.c.bf16 %v3318_v42, %v3316_v41 }
 0x31e   : > { %3827 = vmatprep.subr.bf16.mxu1 %v3826_v46  ;;  %v3866_v46 = vpack.c.bf16 %v3323_v44, %v3321_v43  ;;  %v2186_v44 = vld [vmem:[%s5833_s8 + $0x10] sm:$0xff] }
 0x321   : > { %3829 = vmatpush1.bf16.msra.mxu1 %v3828_v12  ;;  %v2091_v12 = vrot.slane %v2086_v6, %v4598_v27 }
 0x322   : > { %3831 = vmatprep.subr.bf16.mxu1 %v3830_v50  ;;  %v2095_v50 = vrot.slane %v2086_v6, %v4603_v7  ;;  %v2190_v6 = vld [vmem:[%s5833_s8 + $0x30] sm:$0xff] }
 0x325   : > { %3833 = vmatpush1.bf16.msra.mxu1 %v3832_v55 }
 0x326   : > { %3835 = vmatprep.subr.bf16.mxu1 %v3834_v56 }
 0x329   : > { %3837 = vmatpush1.bf16.msra.mxu1 %v3836_v61  ;;  %v4229_v61 = vmov 0.0|0.0  }
 0x32a   : > { %3839 = vmatprep.subr.bf16.mxu1 %v3838_v62  ;;  %v3334_v62 = vld [vmem:[%s5833_s8 + $0xd0] sm:$0xff] }
 0x32b   : > { %v3874_v0 = vpack.c.bf16 %v3335_v63, %v3334_v62  ;;  %v2198_v62 = vld [vmem:[%s5833_s8 + $0x70] sm:$0xff]  ;;  %v2199_v63 = vld [vmem:[%s5833_s8 + $0x78] sm:$0xff] }
 0x32d   : > { %3841 = vmatpush1.bf16.msra.mxu1 %v3840_v3  ;;  %v3877_v3 = vpack.c.bf16 %v3337_v2, %v3336_v1  ;;  %v2200_v1 = vld [vmem:[%s5833_s8 + $0x80] sm:$0xff]  ;;  %v2201_v2 = vld [vmem:[%s5833_s8 + $0x88] sm:$0xff] }
 0x32e   : > { %3843 = vmatprep.subr.bf16.mxu1 %v3842_v4  ;;  %v3338_v4 = vld [vmem:[%s5833_s8 + $0xf0] sm:$0xff] }
 0x32f   : > { %v3880_v9 = vpack.c.bf16 %v3339_v5, %v3338_v4  ;;  %v2202_v4 = vld [vmem:[%s5833_s8 + $0x90] sm:$0xff]  ;;  %v2203_v5 = vld [vmem:[%s5833_s8 + $0x98] sm:$0xff] }
 0x331   : > { %3845 = vmatpush1.bf16.msra.mxu1 %v3844_v13  ;;  %v3883_v13 = vpack.c.bf16 %v3341_v11, %v3340_v10  ;;  %v2204_v10 = vld [vmem:[%s5833_s8 + $0xa0] sm:$0xff]  ;;  %v2205_v11 = vld [vmem:[%s5833_s8 + $0xa8] sm:$0xff] }
 0x332   : > { %3847 = vmatprep.subr.bf16.mxu1 %v3846_v14  ;;  %v3342_v14 = vld [vmem:[%s5833_s8 + $0x110] sm:$0xff] }
 0x333   : > { %v3886_v16 = vpack.c.bf16 %v3343_v15, %v3342_v14  ;;  %v2206_v14 = vld [vmem:[%s5833_s8 + $0xb0] sm:$0xff]  ;;  %v2207_v15 = vld [vmem:[%s5833_s8 + $0xb8] sm:$0xff] }
 0x335   : > { %3849 = vmatpush1.bf16.msra.mxu1 %v3848_v19  ;;  %v3889_v19 = vpack.c.bf16 %v3345_v18, %v3344_v17  ;;  %v3358_v17 = vld [vmem:[%s5832_s7 + $0x4] sm:$0x3] }
 0x336   : > { %3851 = vmatprep.subr.bf16.mxu1 %v3850_v20  ;;  %v3346_v20 = vld [vmem:[%s5833_s8 + $0x130] sm:$0xff]  ;;  %v3362_v18 = vld [vmem:[%s5833_s8 + $0x180] sm:$0xff] }
 0x337   : > { %v3892_v22 = vpack.c.bf16 %v3347_v21, %v3346_v20  ;;  %v3365_v20 = vld [vmem:[%s5833_s8 + $0x198] sm:$0xff] }
 0x339   : > { %3853 = vmatpush1.bf16.msra.mxu1 %v3852_v25  ;;  %v3895_v25 = vpack.c.bf16 %v3349_v24, %v3348_v23  ;;  %v3367_v23 = vld [vmem:[%s5833_s8 + $0x1a8] sm:$0xff] }
 0x33a   : > { %3855 = vmatprep.subr.bf16.mxu1 %v3854_v26  ;;  %v3350_v26 = vld [vmem:[%s5833_s8 + $0x150] sm:$0xff] }
 0x33b   : > { %v3898_v29 = vpack.c.bf16 %v3351_v28, %v3350_v26  ;;  %v3369_v26 = vld [vmem:[%s5833_s8 + $0x1b8] sm:$0xff] }
 0x33d   : > { %3857 = vmatpush1.bf16.msra.mxu1 %v3856_v33  ;;  %v3901_v33 = vpack.c.bf16 %v3353_v31, %v3352_v30  ;;  %v3371_v30 = vld [vmem:[%s5833_s8 + $0x1c8] sm:$0xff] }
 0x33e   : > { %3859 = vmatprep.subr.bf16.mxu1 %v3858_v34  ;;  %v3354_v34 = vld [vmem:[%s5833_s8 + $0x170] sm:$0xff] }
 0x33f   : > { %v3904_v36 = vpack.c.bf16 %v3355_v35, %v3354_v34  ;;  %v3373_v34 = vld [vmem:[%s5833_s8 + $0x1d8] sm:$0xff] }
 0x341   : > { %3861 = vmatpush1.bf16.msra.mxu1 %v3860_v39  ;;  %v2184_v39 = vld [vmem:[%s5833_s8] sm:$0xff] }
 0x342   : > { %3863 = vmatprep.subr.bf16.mxu1 %v3862_v40  ;;  %v2185_v40 = vld [vmem:[%s5833_s8 + $0x8] sm:$0xff] }
 0x343   : > { %v3907_v42 = vpack.c.bf16 %v2185_v40, %v2184_v39  ;;  %v3376_v39 = vld [vmem:[%s5833_s8 + $0x1f0] sm:$0xff]  ;;  %v3377_v40 = vld [vmem:[%s5833_s8 + $0x1f8] sm:$0xff] }
 0x345   : > { %3865 = vmatpush1.bf16.msra.mxu1 %v3864_v45  ;;  %v2187_v45 = vld [vmem:[%s5833_s8 + $0x18] sm:$0xff] }
 0x346   : > { %3867 = vmatprep.subr.bf16.mxu1 %v3866_v46  ;;  %v3910_v46 = vpack.c.bf16 %v2187_v45, %v2186_v44  ;;  %v3380_v45 = vld [vmem:[%s5833_s8 + $0x210] sm:$0xff] }
 0x349   : > { %3869 = vmatpush1.bf16.msra.mxu1 %v3868_v49  ;;  %v3913_v49 = vpack.c.bf16 %v2189_v48, %v2188_v47  ;;  %v3382_v48 = vld [vmem:[%s5833_s8 + $0x220] sm:$0xff] }
 0x34c   : > { %2078 = vmatmul.mubr.f32.vlgmr.msra.gmra.mrb[14].mxu1 %v4802_v8  ;;  %v2102_v8 = vld [vmem:[%s5832_s7] sm:$0x3] }
 0x34d   : > { %2772 = vmatprep.mubr.f32.mxu1 %v4228_v32 }
 0x41f   : > { %v2079_v51 = vpop.f32.mrb[14].mxu1 }
 0x420   : > { %v2098_v52 = vadd.f32 %v2091_v12, %v2079_v51  ;;  %v2081_v53 = vpop.f32.mrb[15].mxu1  ;;  %v2191_v12 = vld [vmem:[%s5833_s8 + $0x38] sm:$0xff]  ;;  %v2192_v51 = vld [vmem:[%s5833_s8 + $0x40] sm:$0xff] }
 0x421   : > { %v2099_v54 = vadd.f32 %v2095_v50, %v2081_v53  ;;  %v3916_v50 = vpack.c.bf16 %v2191_v12, %v2190_v6  ;;  %v3384_v12 = vld [vmem:[%s5833_s8 + $0x230] sm:$0xff] }
 0x422   : > { %v5126_v56 = vmax.f32 %v2098_v52, 0.0  ;;  %v2193_v52 = vld [vmem:[%s5833_s8 + $0x48] sm:$0xff] }
 0x423   : > { %v5124_v55 = vmax.f32 %v2099_v54, 0.0  ;;  %v3919_v53 = vpack.c.bf16 %v2193_v52, %v2192_v51  ;;  %v2194_v54 = vld [vmem:[%s5833_s8 + $0x50] sm:$0xff]  ;;  %v3389_v52 = vld [vmem:[%s5835_s10 + $0x108] sm:$0xff] }
 0x425   : > { %3325 = vmatprep.subr.msk.mxu0 %vm532_vm1, %v5124_v55 }
 0x426   : > { %3326 = vmatpush1.msk.msra.mxu0 %vm532_vm1, %v5126_v56 }
 0x427   : > { %3327 = vmatmul.mubr.msk.f32.vlgmr.msra.gmra.mrb[6].mxu0 %vm2103_vm8, %v2102_v8  ;;  %3329 = vmatprep.subr.msk.mxu0 %vm532_vm1, %v5124_v55  ;;  %v2195_v8 = vld [vmem:[%s5833_s8 + $0x58] sm:$0xff] }
 0x428   : > { %3330 = vmatpush1.msk.msra.mxu0 %vm532_vm1, %v5126_v56  ;;  %2277 = vmatprep.mubr.f32.mxu0 %v4228_v32  ;;  %v3922_v57 = vpack.c.bf16 %v2195_v8, %v2194_v54  ;;  %v3388_v54 = vld [vmem:[%s5835_s10 + $0x100] sm:$0xff] }
 0x429   : > { %3870 = vmatprep.subr.bf16.mxu0 %v4229_v61 }
 0x42b   : > { %3331 = vmatmul.mubr.msk.f32.vlgmr.msra.gmra.mrb[8].mxu0 %vm2103_vm8, %v3328_v59  ;;  %v2197_v59 = vld [vmem:[%s5833_s8 + $0x68] sm:$0xff] }
 0x42c   : > { %3872 = vmatpush1.bf16.msra.mxu0 %v3871_v60  ;;  %v3925_v60 = vpack.c.bf16 %v2197_v59, %v2196_v58  ;;  %v3393_v58 = vld [vmem:[%s5835_s10 + $0x128] sm:$0xff]  ;;  %v3395_v59 = vld [vmem:[%s5835_s10 + $0x138] sm:$0xff] }
 0x42d   : > { %3873 = vmatprep.subr.bf16.mxu0 %v4229_v61 }
 0x430   : > { %3875 = vmatpush1.bf16.msra.mxu0 %v3874_v0  ;;  %v3928_v0 = vpack.c.bf16 %v2199_v63, %v2198_v62  ;;  %v3982_v62 = vpack.c.bf16 %v3395_v59, %v3393_v58  ;;  %v3392_v63 = vld [vmem:[%s5835_s10 + $0x120] sm:$0xff] }
 0x431   : > { %3876 = vmatprep.subr.bf16.mxu0 %v4229_v61 }
 0x434   : > { %3878 = vmatpush1.bf16.msra.mxu0 %v3877_v3  ;;  %v3931_v3 = vpack.c.bf16 %v2201_v2, %v2200_v1  ;;  %v3397_v1 = vld [vmem:[%s5835_s10 + $0x148] sm:$0xff]  ;;  %v3399_v2 = vld [vmem:[%s5835_s10 + $0x158] sm:$0xff] }
 0x435   : > { %3879 = vmatprep.subr.bf16.mxu0 %v4229_v61 }
 0x438   : > { %3881 = vmatpush1.bf16.msra.mxu0 %v3880_v9  ;;  %v3934_v9 = vpack.c.bf16 %v2203_v5, %v2202_v4  ;;  %v3986_v4 = vpack.c.bf16 %v3399_v2, %v3397_v1  ;;  %v3396_v5 = vld [vmem:[%s5835_s10 + $0x140] sm:$0xff] }
 0x439   : > { %3882 = vmatprep.subr.bf16.mxu0 %v4229_v61 }
 0x43c   : > { %3884 = vmatpush1.bf16.msra.mxu0 %v3883_v13  ;;  %v3937_v13 = vpack.c.bf16 %v2205_v11, %v2204_v10  ;;  %v3401_v10 = vld [vmem:[%s5835_s10 + $0x168] sm:$0xff]  ;;  %v3403_v11 = vld [vmem:[%s5835_s10 + $0x178] sm:$0xff] }
 0x43d   : > { %3885 = vmatprep.subr.bf16.mxu0 %v4229_v61 }
 0x440   : > { %3887 = vmatpush1.bf16.msra.mxu0 %v3886_v16  ;;  %v3940_v16 = vpack.c.bf16 %v2207_v15, %v2206_v14  ;;  %v3990_v14 = vpack.c.bf16 %v3403_v11, %v3401_v10  ;;  %v3400_v15 = vld [vmem:[%s5835_s10 + $0x160] sm:$0xff] }
 0x441   : > { %3888 = vmatprep.subr.bf16.mxu0 %v4229_v61 }
 0x444   : > { %3890 = vmatpush1.bf16.msra.mxu0 %v3889_v19 }
 0x445   : > { %3891 = vmatprep.subr.bf16.mxu0 %v4229_v61 }
 0x448   : > { %3893 = vmatpush1.bf16.msra.mxu0 %v3892_v22  ;;  %v3366_v22 = vld [vmem:[%s5833_s8 + $0x1a0] sm:$0xff] }
 0x449   : > { %3894 = vmatprep.subr.bf16.mxu0 %v4229_v61  ;;  %v3949_v24 = vpack.c.bf16 %v3367_v23, %v3366_v22  ;;  %v3411_v22 = vld [vmem:[%s5835_s10 + $0x1b8] sm:$0xff] }
 0x44c   : > { %3896 = vmatpush1.bf16.msra.mxu0 %v3895_v25  ;;  %v3368_v25 = vld [vmem:[%s5833_s8 + $0x1b0] sm:$0xff] }
 0x44d   : > { %3897 = vmatprep.subr.bf16.mxu0 %v4229_v61  ;;  %v3952_v28 = vpack.c.bf16 %v3369_v26, %v3368_v25  ;;  %v3408_v25 = vld [vmem:[%s5835_s10 + $0x1a0] sm:$0xff]  ;;  %v3410_v26 = vld [vmem:[%s5835_s10 + $0x1b0] sm:$0xff] }
 0x450   : > { %3899 = vmatpush1.bf16.msra.mxu0 %v3898_v29  ;;  %v3370_v29 = vld [vmem:[%s5833_s8 + $0x1c0] sm:$0xff] }
 0x451   : > { %3900 = vmatprep.subr.bf16.mxu0 %v4229_v61  ;;  %v3955_v31 = vpack.c.bf16 %v3371_v30, %v3370_v29 }
 0x454   : > { %3902 = vmatpush1.bf16.msra.mxu0 %v3901_v33  ;;  %v3372_v33 = vld [vmem:[%s5833_s8 + $0x1d0] sm:$0xff] }
 0x455   : > { %3903 = vmatprep.subr.bf16.mxu0 %v4229_v61  ;;  %v3958_v35 = vpack.c.bf16 %v3373_v34, %v3372_v33 }
 0x458   : > { %3905 = vmatpush1.bf16.msra.mxu0 %v3904_v36  ;;  %v3374_v36 = vld [vmem:[%s5833_s8 + $0x1e0] sm:$0xff] }
 0x459   : > { %3906 = vmatprep.subr.bf16.mxu0 %v4229_v61 }
 0x4fa   : > { %v5230_v37 = vpop.f32.mrb[6].mxu0 }
 0x4fb   : > { %v2181_v38 = vpop.f32.mrb[7].mxu0 }
 0x4fe   : > { %v2279_v41 = vpop.f32.mrb[8].mxu0 }
 0x4ff   : > { %v2281_v43 = vpop.f32.mrb[9].mxu0 }
 0x500   : > { %3356 = vmatprep.mubr.msk.f32.mxu0 %vm2309_vm9, %v2281_v43  ;;  %v3379_v43 = vld [vmem:[%s5833_s8 + $0x208] sm:$0xff] }
 0x501   : > { %2378 = vmatmul.mubr.f32.vlgmr.msra.gmra.mrb[10].mxu0 %v2279_v41  ;;  %v3964_v41 = vpack.c.bf16 %v3377_v40, %v3376_v39  ;;  %v3412_v40 = vld [vmem:[%s5835_s10 + $0x1c0] sm:$0xff] }
 0x502   : > { %3908 = vmatpush1.bf16.msra.mxu0 %v3907_v42  ;;  %3357 = vmatprep.mubr.msk.f32.mxu0 %vm2309_vm9, %v2181_v38  ;;  %v3378_v42 = vld [vmem:[%s5833_s8 + $0x200] sm:$0xff] }
 0x503   : > { %3909 = vmatprep.subr.bf16.mxu0 %v4229_v61  ;;  %v3967_v44 = vpack.c.bf16 %v3379_v43, %v3378_v42  ;;  %v3417_v43 = vld [vmem:[%s5835_s10 + $0x1e8] sm:$0xff] }
 0x506   : > { %3911 = vmatpush1.bf16.msra.mxu0 %v3910_v46  ;;  %v3381_v46 = vld [vmem:[%s5833_s8 + $0x218] sm:$0xff] }
 0x507   : > { %3912 = vmatprep.subr.bf16.mxu0 %v4229_v61  ;;  %v3970_v47 = vpack.c.bf16 %v3381_v46, %v3380_v45  ;;  %v3416_v46 = vld [vmem:[%s5835_s10 + $0x1e0] sm:$0xff] }
 0x50a   : > { %3914 = vmatpush1.bf16.msra.mxu0 %v3913_v49  ;;  %v3383_v49 = vld [vmem:[%s5833_s8 + $0x228] sm:$0xff] }
 0x50b   : > { %3915 = vmatprep.subr.bf16.mxu0 %v4229_v61  ;;  %v3973_v6 = vpack.c.bf16 %v3383_v49, %v3382_v48  ;;  %v2641_v49 = vld [vmem:[%s5835_s10 + $0x8] sm:$0xff] }
 0x50e   : > { %3917 = vmatpush1.bf16.msra.mxu0 %v3916_v50  ;;  %v3385_v50 = vld [vmem:[%s5833_s8 + $0x238] sm:$0xff] }
 0x50f   : > { %3918 = vmatprep.subr.bf16.mxu0 %v4229_v61  ;;  %v3976_v51 = vpack.c.bf16 %v3385_v50, %v3384_v12  ;;  %v2882_v50 = vld [vmem:[%s5837_s12 + $0x80] sm:$0xff] }
 0x512   : > { %3920 = vmatpush1.bf16.msra.mxu0 %v3919_v53  ;;  %v3391_v53 = vld [vmem:[%s5835_s10 + $0x118] sm:$0xff] }
 0x513   : > { %3921 = vmatprep.subr.bf16.mxu0 %v4229_v61  ;;  %v3978_v8 = vpack.c.bf16 %v3391_v53, %v3389_v52  ;;  %v2866_v52 = vld [vmem:[%s5837_s12] sm:$0xff] }
 0x515   : > { %3979 = vmatprep.subr.bf16.mxu1 %v3978_v8  ;;  %v2884_v8 = vld [vmem:[%s5837_s12 + $0x90] sm:$0xff] }
 0x516   : > { %3923 = vmatpush1.bf16.msra.mxu0 %v3922_v57  ;;  %v3390_v57 = vld [vmem:[%s5835_s10 + $0x110] sm:$0xff] }
 0x517   : > { %3924 = vmatprep.subr.bf16.mxu0 %v4229_v61 }
 0x51a   : > { %3926 = vmatpush1.bf16.msra.mxu0 %v3925_v60  ;;  %v3980_v60 = vpack.c.bf16 %v3390_v57, %v3388_v54  ;;  %v2867_v54 = vld [vmem:[%s5837_s12 + $0x8] sm:$0xff]  ;;  %v2885_v57 = vld [vmem:[%s5837_s12 + $0x98] sm:$0xff] }
 0x51b   : > { %3927 = vmatprep.subr.bf16.mxu0 %v4229_v61  ;;  %v4044_v58 = vpack.c.bf16 %v2867_v54, %v2866_v52  ;;  %v4046_v59 = vpack.c.bf16 %v2885_v57, %v2884_v8  ;;  %v2652_v54 = vld [vmem:[%s5835_s10 + $0x60] sm:$0xff]  ;;  %v2654_v8 = vld [vmem:[%s5835_s10 + $0x70] sm:$0xff]  ;;  %v2657_v57 = vld [vmem:[%s5835_s10 + $0x88] sm:$0xff] }
 0x51c   : > { %3981 = vmatpush1.bf16.msra.mxu1 %v3980_v60  ;;  %v2868_v60 = vld [vmem:[%s5837_s12 + $0x10] sm:$0xff] }
 0x51d   : > { %3983 = vmatprep.subr.bf16.mxu1 %v3982_v62  ;;  %v2869_v62 = vld [vmem:[%s5837_s12 + $0x18] sm:$0xff] }
 0x51e   : > { %3929 = vmatpush1.bf16.msra.mxu0 %v3928_v0  ;;  %v3394_v0 = vld [vmem:[%s5835_s10 + $0x130] sm:$0xff]  ;;  %v4048_v1 = vpack.c.bf16 %v2869_v62, %v2868_v60  ;;  %v2656_v62 = vld [vmem:[%s5835_s10 + $0x80] sm:$0xff] }
 0x51f   : > { %3930 = vmatprep.subr.bf16.mxu0 %v4229_v61 }
 0x522   : > { %3932 = vmatpush1.bf16.msra.mxu0 %v3931_v3  ;;  %v3984_v3 = vpack.c.bf16 %v3394_v0, %v3392_v63  ;;  %v2886_v63 = vld [vmem:[%s5837_s12 + $0xa0] sm:$0xff]  ;;  %v2887_v0 = vld [vmem:[%s5837_s12 + $0xa8] sm:$0xff] }
 0x523   : > { %3933 = vmatprep.subr.bf16.mxu0 %v4229_v61  ;;  %v4050_v2 = vpack.c.bf16 %v2887_v0, %v2886_v63  ;;  %v2658_v63 = vld [vmem:[%s5835_s10 + $0x90] sm:$0xff]  ;;  %v2661_v0 = vld [vmem:[%s5835_s10 + $0xa8] sm:$0xff] }
 0x524   : > { %3985 = vmatpush1.bf16.msra.mxu1 %v3984_v3  ;;  %v2870_v3 = vld [vmem:[%s5837_s12 + $0x20] sm:$0xff] }
 0x525   : > { %3987 = vmatprep.subr.bf16.mxu1 %v3986_v4  ;;  %v2871_v4 = vld [vmem:[%s5837_s12 + $0x28] sm:$0xff] }
 0x526   : > { %3935 = vmatpush1.bf16.msra.mxu0 %v3934_v9  ;;  %v3398_v9 = vld [vmem:[%s5835_s10 + $0x150] sm:$0xff]  ;;  %v4052_v10 = vpack.c.bf16 %v2871_v4, %v2870_v3  ;;  %v2660_v4 = vld [vmem:[%s5835_s10 + $0xa0] sm:$0xff] }
 0x527   : > { %3936 = vmatprep.subr.bf16.mxu0 %v4229_v61 }
 0x52a   : > { %3938 = vmatpush1.bf16.msra.mxu0 %v3937_v13  ;;  %v3988_v13 = vpack.c.bf16 %v3398_v9, %v3396_v5  ;;  %v2888_v5 = vld [vmem:[%s5837_s12 + $0xb0] sm:$0xff]  ;;  %v2889_v9 = vld [vmem:[%s5837_s12 + $0xb8] sm:$0xff] }
 0x52b   : > { %3939 = vmatprep.subr.bf16.mxu0 %v4229_v61  ;;  %v4054_v11 = vpack.c.bf16 %v2889_v9, %v2888_v5  ;;  %v2662_v5 = vld [vmem:[%s5835_s10 + $0xb0] sm:$0xff]  ;;  %v2665_v9 = vld [vmem:[%s5835_s10 + $0xc8] sm:$0xff] }
 0x52c   : > { %3989 = vmatpush1.bf16.msra.mxu1 %v3988_v13  ;;  %v2872_v13 = vld [vmem:[%s5837_s12 + $0x30] sm:$0xff] }
 0x52d   : > { %3991 = vmatprep.subr.bf16.mxu1 %v3990_v14  ;;  %v2873_v14 = vld [vmem:[%s5837_s12 + $0x38] sm:$0xff] }
 0x52e   : > { %3941 = vmatpush1.bf16.msra.mxu0 %v3940_v16  ;;  %v3402_v16 = vld [vmem:[%s5835_s10 + $0x170] sm:$0xff] }
 0x52f   : > { %3359 = vmatprep.subr.msk.mxu0 %vm532_vm1, %v5124_v55  ;;  %v3363_v55 = vld [vmem:[%s5833_s8 + $0x188] sm:$0xff] }
 0x530   : > { %v3943_v19 = vpack.c.bf16 %v3363_v55, %v3362_v18  ;;  %v3407_v18 = vld [vmem:[%s5835_s10 + $0x198] sm:$0xff]  ;;  %v3992_v55 = vpack.c.bf16 %v3402_v16, %v3400_v15  ;;  %v2890_v15 = vld [vmem:[%s5837_s12 + $0xc0] sm:$0xff]  ;;  %v2891_v16 = vld [vmem:[%s5837_s12 + $0xc8] sm:$0xff] }
 0x531   : > { %2451 = vmatmul.mubr.f32.vlgmr.msra.gmra.mrb[12].mxu0 %v5230_v37  ;;  %v3375_v37 = vld [vmem:[%s5833_s8 + $0x1e8] sm:$0xff] }
 0x532   : > { %3360 = vmatpush1.msk.msra.mxu0 %vm532_vm1, %v5126_v56  ;;  %2525 = vmatprep.mubr.f32.mxu0 %v4228_v32  ;;  %v3364_v56 = vld [vmem:[%s5833_s8 + $0x190] sm:$0xff]  ;;  %v3961_v38 = vpack.c.bf16 %v3375_v37, %v3374_v36  ;;  %v3413_v37 = vld [vmem:[%s5835_s10 + $0x1c8] sm:$0xff] }
 0x533   : > { %3942 = vmatprep.subr.bf16.mxu0 %v4229_v61  ;;  %v3946_v21 = vpack.c.bf16 %v3365_v20, %v3364_v56  ;;  %v3406_v20 = vld [vmem:[%s5835_s10 + $0x190] sm:$0xff]  ;;  %3993 = vmatpush1.bf16.msra.mxu1 %v3992_v55  ;;  %v2874_v55 = vld [vmem:[%s5837_s12 + $0x40] sm:$0xff] }
 0x535   : > { %3361 = vmatmul.mubr.msk.f32.vlgmr.msra.gmra.mrb[14].mxu0 %vm2103_vm8, %v3358_v17  ;;  %v3405_v17 = vld [vmem:[%s5835_s10 + $0x188] sm:$0xff] }
 0x536   : > { %3944 = vmatpush1.bf16.msra.mxu0 %v3943_v19  ;;  %v3994_v56 = vpack.c.bf16 %v3407_v18, %v3405_v17  ;;  %v3404_v19 = vld [vmem:[%s5835_s10 + $0x180] sm:$0xff]  ;;  %v4056_v17 = vpack.c.bf16 %v2873_v14, %v2872_v13  ;;  %v4058_v18 = vpack.c.bf16 %v2891_v16, %v2890_v15  ;;  %v2666_v15 = vld [vmem:[%s5835_s10 + $0xd0] sm:$0xff]  ;;  %v2669_v16 = vld [vmem:[%s5835_s10 + $0xe8] sm:$0xff] }
 0x537   : > { %3945 = vmatprep.subr.bf16.mxu0 %v4229_v61  ;;  %v3996_v23 = vpack.c.bf16 %v3406_v20, %v3404_v19  ;;  %v2892_v19 = vld [vmem:[%s5837_s12 + $0xd0] sm:$0xff]  ;;  %v2893_v20 = vld [vmem:[%s5837_s12 + $0xd8] sm:$0xff]  ;;  %v2664_v14 = vld [vmem:[%s5835_s10 + $0xc0] sm:$0xff] }
 0x538   : > { %3995 = vmatprep.subr.bf16.mxu1 %v3994_v56  ;;  %v2875_v56 = vld [vmem:[%s5837_s12 + $0x48] sm:$0xff] }
 0x539   : > { %3997 = vmatpush1.bf16.msra.mxu1 %v3996_v23  ;;  %v2876_v23 = vld [vmem:[%s5837_s12 + $0x50] sm:$0xff] }
 0x53a   : > { %3947 = vmatpush1.bf16.msra.mxu0 %v3946_v21  ;;  %v3409_v21 = vld [vmem:[%s5835_s10 + $0x1a8] sm:$0xff] }
 0x53b   : > { %3948 = vmatprep.subr.bf16.mxu0 %v4229_v61 }
 0x53e   : > { %3950 = vmatpush1.bf16.msra.mxu0 %v3949_v24  ;;  %v3998_v24 = vpack.c.bf16 %v3411_v22, %v3409_v21  ;;  %v4060_v21 = vpack.c.bf16 %v2875_v56, %v2874_v55  ;;  %v4062_v22 = vpack.c.bf16 %v2893_v20, %v2892_v19  ;;  %v2668_v56 = vld [vmem:[%s5835_s10 + $0xe0] sm:$0xff]  ;;  %v2670_v19 = vld [vmem:[%s5835_s10 + $0xf0] sm:$0xff] }
 0x53f   : > { %3951 = vmatprep.subr.bf16.mxu0 %v4229_v61  ;;  %v4040_v20 = vpack.c.bf16 %v2670_v19, %v2668_v56 }
 0x540   : > { %3999 = vmatprep.subr.bf16.mxu1 %v3998_v24  ;;  %v2877_v24 = vld [vmem:[%s5837_s12 + $0x58] sm:$0xff] }
 0x542   : > { %3953 = vmatpush1.bf16.msra.mxu0 %v3952_v28  ;;  %v4000_v28 = vpack.c.bf16 %v3410_v26, %v3408_v25  ;;  %v2894_v25 = vld [vmem:[%s5837_s12 + $0xe0] sm:$0xff]  ;;  %v2895_v26 = vld [vmem:[%s5837_s12 + $0xe8] sm:$0xff] }
 0x543   : > { %3954 = vmatprep.subr.bf16.mxu0 %v4229_v61 }
 0x544   : > { %4001 = vmatpush1.bf16.msra.mxu1 %v4000_v28  ;;  %v4064_v28 = vpack.c.bf16 %v2877_v24, %v2876_v23  ;;  %v2896_v24 = vld [vmem:[%s5837_s12 + $0xf0] sm:$0xff] }
 0x546   : > { %3956 = vmatpush1.bf16.msra.mxu0 %v3955_v31 }
 0x547   : > { %3957 = vmatprep.subr.bf16.mxu0 %v4229_v61 }
 0x54a   : > { %3959 = vmatpush1.bf16.msra.mxu0 %v3958_v35 }
 0x54b   : > { %3960 = vmatprep.subr.bf16.mxu0 %v4229_v61 }
 0x54e   : > { %3962 = vmatpush1.bf16.msra.mxu0 %v3961_v38  ;;  %v3415_v38 = vld [vmem:[%s5835_s10 + $0x1d8] sm:$0xff] }
 0x54f   : > { %3963 = vmatprep.subr.bf16.mxu0 %v4229_v61  ;;  %v4002_v39 = vpack.c.bf16 %v3415_v38, %v3413_v37  ;;  %v2640_v37 = vld [vmem:[%s5835_s10] sm:$0xff]  ;;  %v2642_v38 = vld [vmem:[%s5835_s10 + $0x10] sm:$0xff] }
 0x551   : > { %4003 = vmatprep.subr.bf16.mxu1 %v4002_v39  ;;  %v2645_v39 = vld [vmem:[%s5835_s10 + $0x28] sm:$0xff] }
 0x552   : > { %3965 = vmatpush1.bf16.msra.mxu0 %v3964_v41  ;;  %v3414_v41 = vld [vmem:[%s5835_s10 + $0x1d0] sm:$0xff] }
 0x553   : > { %3966 = vmatprep.subr.bf16.mxu0 %v4229_v61  ;;  %v4004_v42 = vpack.c.bf16 %v3414_v41, %v3412_v40  ;;  %v2647_v40 = vld [vmem:[%s5835_s10 + $0x38] sm:$0xff]  ;;  %v4012_v41 = vpack.c.bf16 %v2642_v38, %v2640_v37 }
 0x555   : > { %4005 = vmatpush1.bf16.msra.mxu1 %v4004_v42 }
 0x556   : > { %3968 = vmatpush1.bf16.msra.mxu0 %v3967_v44  ;;  %v3419_v44 = vld [vmem:[%s5835_s10 + $0x1f8] sm:$0xff] }
 0x557   : > { %3969 = vmatprep.subr.bf16.mxu0 %v4229_v61  ;;  %v4006_v45 = vpack.c.bf16 %v3419_v44, %v3417_v43  ;;  %v4014_v43 = vpack.c.bf16 %v2647_v40, %v2645_v39  ;;  %v2644_v44 = vld [vmem:[%s5835_s10 + $0x20] sm:$0xff]  ;;  %v2971_v40 = vld [vmem:[%s5839_s14 + $0x8] sm:$0xff] }
 0x558   : > { %v2970_v39 = vld [vmem:[%s5839_s14] sm:$0xff] }
 0x559   : > { %4007 = vmatprep.subr.bf16.mxu1 %v4006_v45  ;;  %v2646_v45 = vld [vmem:[%s5835_s10 + $0x30] sm:$0xff] }
 0x55a   : > { %3971 = vmatpush1.bf16.msra.mxu0 %v3970_v47  ;;  %v3418_v47 = vld [vmem:[%s5835_s10 + $0x1f0] sm:$0xff] }
 0x55b   : > { %3972 = vmatprep.subr.bf16.mxu0 %v4229_v61  ;;  %v4008_v48 = vpack.c.bf16 %v3418_v47, %v3416_v46  ;;  %v2649_v46 = vld [vmem:[%s5835_s10 + $0x48] sm:$0xff]  ;;  %v2651_v47 = vld [vmem:[%s5835_s10 + $0x58] sm:$0xff] }
 0x55d   : > { %4009 = vmatpush1.bf16.msra.mxu1 %v4008_v48  ;;  %v4016_v48 = vpack.c.bf16 %v2646_v45, %v2644_v44  ;;  %v2974_v45 = vld [vmem:[%s5839_s14 + $0x20] sm:$0xff] }
 0x55e   : > { %3974 = vmatpush1.bf16.msra.mxu0 %v3973_v6  ;;  %v2643_v6 = vld [vmem:[%s5835_s10 + $0x18] sm:$0xff] }
 0x55f   : > { %3975 = vmatprep.subr.bf16.mxu0 %v4229_v61  ;;  %v4010_v12 = vpack.c.bf16 %v2643_v6, %v2641_v49  ;;  %v4018_v49 = vpack.c.bf16 %v2651_v47, %v2649_v46  ;;  %v2648_v6 = vld [vmem:[%s5835_s10 + $0x40] sm:$0xff]  ;;  %v2975_v46 = vld [vmem:[%s5839_s14 + $0x28] sm:$0xff] }
 0x560   : > { %v4081_v47 = vpack.c.bf16 %v2975_v46, %v2974_v45 }
 0x561   : > { %4011 = vmatprep.subr.bf16.mxu1 %v4010_v12  ;;  %v2650_v12 = vld [vmem:[%s5835_s10 + $0x50] sm:$0xff] }
 0x562   : > { %3977 = vmatpush1.bf16.msra.mxu0 %v3976_v51  ;;  %v2883_v51 = vld [vmem:[%s5837_s12 + $0x88] sm:$0xff]  ;;  %v4020_v52 = vpack.c.bf16 %v2650_v12, %v2648_v6  ;;  %v2978_v12 = vld [vmem:[%s5839_s14 + $0x40] sm:$0xff] }
 0x563   : > { %v4042_v53 = vpack.c.bf16 %v2883_v51, %v2882_v50  ;;  %v2653_v50 = vld [vmem:[%s5835_s10 + $0x68] sm:$0xff]  ;;  %v2655_v51 = vld [vmem:[%s5835_s10 + $0x78] sm:$0xff] }
 0x565   : > { %4043 = vmatprep.subr.bf16.mxu0 %v4042_v53  ;;  %v4022_v53 = vpack.c.bf16 %v2655_v51, %v2653_v50  ;;  %v2979_v50 = vld [vmem:[%s5839_s14 + $0x48] sm:$0xff] }
 0x566   : > { %v4087_v51 = vpack.c.bf16 %v2979_v50, %v2978_v12 }
 0x5d4   : > { %v2379_v29 = vpop.f32.mrb[10].mxu0 }
 0x5d5   : > { %v2381_v30 = vpop.f32.mrb[11].mxu0 }
 0x604   : > { %v2452_v31 = vpop.f32.mrb[12].mxu0 }
 0x605   : > { %v5483_v33 = vadd.f32 %v2452_v31, %v2379_v29  ;;  %v2454_v34 = vpop.f32.mrb[13].mxu0  ;;  %v4066_v29 = vpack.c.bf16 %v2895_v26, %v2894_v25  ;;  %v3387_v31 = vld [vmem:[%s5834_s9] ss:$0 sm:$0xff]  ;;  %v2897_v25 = vld [vmem:[%s5837_s12 + $0xf8] sm:$0xff] }
 0x606   : > { %v4070_v26 = vpack.c.bf16 %v2897_v25, %v2896_v24 }
 0x608   : > { %v2527_v35 = vpop.f32.mrb[14].mxu0 }
 0x609   : > { %v2529_v36 = vpop.f32.mrb[15].mxu0 }
 0x60a   : > { %3386 = vmatprep.mubr.msk.f32.mxu0 %vm2309_vm9, %v2529_v36 }
 0x60b   : > { %2625 = vmatmul.mubr.f32.vlgmr.msra.gmra.mrb[16].mxu0 %v2527_v35 }
 0x60c   : > { %4045 = vmatpush3.bf16.msra.mxu0 %v4044_v58  ;;  %v2659_v58 = vld [vmem:[%s5835_s10 + $0x98] sm:$0xff] }
 0x60d   : > { %4047 = vmatprep.subr.bf16.mxu0 %v4046_v59  ;;  %v4024_v59 = vpack.c.bf16 %v2654_v8, %v2652_v54  ;;  %v4026_v60 = vpack.c.bf16 %v2659_v58, %v2657_v57  ;;  %v2982_v8 = vld [vmem:[%s5839_s14 + $0x60] sm:$0xff]  ;;  %v2983_v57 = vld [vmem:[%s5839_s14 + $0x68] sm:$0xff] }
 0x60e   : > { %v4093_v58 = vpack.c.bf16 %v2983_v57, %v2982_v8 }
 0x610   : > { %4049 = vmatpush3.bf16.msra.mxu0 %v4048_v1  ;;  %v2663_v1 = vld [vmem:[%s5835_s10 + $0xb8] sm:$0xff] }
 0x611   : > { %4051 = vmatprep.subr.bf16.mxu0 %v4050_v2  ;;  %v4028_v2 = vpack.c.bf16 %v2658_v63, %v2656_v62  ;;  %v4030_v3 = vpack.c.bf16 %v2663_v1, %v2661_v0  ;;  %v2898_v0 = vld [vmem:[%s5838_s13] sm:$0x1] }
 0x614   : > { %4053 = vmatpush3.bf16.msra.mxu0 %v4052_v10  ;;  %v2667_v10 = vld [vmem:[%s5835_s10 + $0xd8] sm:$0xff] }
 0x615   : > { %4055 = vmatprep.subr.bf16.mxu0 %v4054_v11  ;;  %v4032_v11 = vpack.c.bf16 %v2662_v5, %v2660_v4  ;;  %v4034_v13 = vpack.c.bf16 %v2667_v10, %v2665_v9  ;;  %v2986_v4 = vld [vmem:[%s5840_s15] sm:$0x1] }
 0x618   : > { %4057 = vmatpush3.bf16.msra.mxu0 %v4056_v17  ;;  %v2671_v17 = vld [vmem:[%s5835_s10 + $0xf8] sm:$0xff] }
 0x619   : > { %4059 = vmatprep.subr.bf16.mxu0 %v4058_v18  ;;  %v4036_v18 = vpack.c.bf16 %v2666_v15, %v2664_v14  ;;  %v4038_v55 = vpack.c.bf16 %v2671_v17, %v2669_v16 }
 0x61c   : > { %4061 = vmatpush3.bf16.msra.mxu0 %v4060_v21  ;;  %v2878_v21 = vld [vmem:[%s5837_s12 + $0x60] sm:$0xff] }
 0x61d   : > { %4063 = vmatprep.subr.bf16.mxu0 %v4062_v22  ;;  %v2879_v22 = vld [vmem:[%s5837_s12 + $0x68] sm:$0xff] }
 0x61e   : > { %v4068_v23 = vpack.c.bf16 %v2879_v22, %v2878_v21 }
 0x620   : > { %4065 = vmatpush3.bf16.msra.mxu0 %v4064_v28  ;;  %v2880_v28 = vld [vmem:[%s5837_s12 + $0x70] sm:$0xff] }
 0x621   : > { %4067 = vmatprep.subr.bf16.mxu0 %v4066_v29  ;;  %v2881_v29 = vld [vmem:[%s5837_s12 + $0x78] sm:$0xff] }
 0x624   : > { %4069 = vmatpush3.bf16.msra.mxu0 %v4068_v23 }
 0x625   : > { %4071 = vmatprep.subr.bf16.mxu0 %v4070_v26 }
 0x6de   : > { %v2626_v30 = vpop.f32.mrb[16].mxu0 }
 0x6df   : > { %v2630_v34 = vadd.f32 %v2626_v30, %v5483_v33  ;;  %v2628_v35 = vpop.f32.mrb[17].mxu0  ;;  %v4072_v30 = vpack.c.bf16 %v2881_v29, %v2880_v28 }
 0x6e1   : > { %v5598_v36 = vadd.f32 %v3387_v31, %v2630_v34  ;;  %4073 = vmatpush3.bf16.msra.mxu0 %v4072_v30  ;;  %v2850_v31 = vld [vmem:[%s5836_s11] sm:$0x3] }
 0x6e2   : > { %4074 = vmatprep.subr.bf16.mxu0 %v4229_v61  ;;  %v2855_v34 = vrot.slane %v2850_v31, %v4598_v27  ;;  %v2859_v35 = vrot.slane %v2850_v31, %v4603_v7  ;;  %v2972_v27 = vld [vmem:[%s5839_s14 + $0x10] sm:$0xff]  ;;  %v2973_v7 = vld [vmem:[%s5839_s14 + $0x18] sm:$0xff] }
 0x6e3   : > { %v2639_v33 = vmax.f32 %v5598_v36, 0.0  ;;  %v4078_v44 = vpack.c.bf16 %v2973_v7, %v2972_v27 }
 0x6e5   : > { %v2706_v42 = vrot.slane %v2639_v33, 1 }
 0x6e7   : > { %2773 = vmatmul.mubr.f32.vlgmr.msra.gmra.mrb[16].mxu1 %v2706_v42  ;;  %v4075_v42 = vpack.c.bf16 %v2971_v40, %v2970_v39 }
 0x6e8   : > { %4013 = vmatpush1.bf16.msra.mxu1 %v4012_v41  ;;  %2843 = vmatprep.mubr.f32.mxu1 %v4228_v32 }
 0x6e9   : > { %4015 = vmatprep.subr.bf16.mxu1 %v4014_v43 }
 0x6ec   : > { %4017 = vmatpush1.bf16.msra.mxu1 %v4016_v48  ;;  %v2976_v48 = vld [vmem:[%s5839_s14 + $0x30] sm:$0xff] }
 0x6ed   : > { %4019 = vmatprep.subr.bf16.mxu1 %v4018_v49  ;;  %v2977_v49 = vld [vmem:[%s5839_s14 + $0x38] sm:$0xff] }
 0x6ee   : > { %v4084_v6 = vpack.c.bf16 %v2977_v49, %v2976_v48 }
 0x6f0   : > { %4021 = vmatpush1.bf16.msra.mxu1 %v4020_v52  ;;  %v2980_v52 = vld [vmem:[%s5839_s14 + $0x50] sm:$0xff] }
 0x6f1   : > { %4023 = vmatprep.subr.bf16.mxu1 %v4022_v53  ;;  %v2981_v53 = vld [vmem:[%s5839_s14 + $0x58] sm:$0xff] }
 0x6f2   : > { %v4090_v54 = vpack.c.bf16 %v2981_v53, %v2980_v52 }
 0x6f4   : > { %4025 = vmatpush1.bf16.msra.mxu1 %v4024_v59  ;;  %v2984_v59 = vld [vmem:[%s5839_s14 + $0x70] sm:$0xff] }
 0x6f5   : > { %4027 = vmatprep.subr.bf16.mxu1 %v4026_v60  ;;  %v2985_v60 = vld [vmem:[%s5839_s14 + $0x78] sm:$0xff] }
 0x6f6   : > { %v4096_v62 = vpack.c.bf16 %v2985_v60, %v2984_v59 }
 0x6f8   : > { %4029 = vmatpush1.bf16.msra.mxu1 %v4028_v2 }
 0x6f9   : > { %4031 = vmatprep.subr.bf16.mxu1 %v4030_v3 }
 0x6fc   : > { %4033 = vmatpush1.bf16.msra.mxu1 %v4032_v11 }
 0x6fd   : > { %4035 = vmatprep.subr.bf16.mxu1 %v4034_v13 }
 0x700   : > { %4037 = vmatpush1.bf16.msra.mxu1 %v4036_v18 }
 0x701   : > { %4039 = vmatprep.subr.bf16.mxu1 %v4038_v55 }
 0x704   : > { %4041 = vmatpush1.bf16.msra.mxu1 %v4040_v20 }
 0x707   : > { %2844 = vmatmul.mubr.f32.vlgmr.msra.gmra.mrb[16].mxu1 %v2639_v33 }
 0x7da   : > { %v2845_v36 = vpop.f32.mrb[16].mxu1 }
 0x7db   : > { %v2862_v37 = vadd.f32 %v2855_v34, %v2845_v36  ;;  %v2847_v38 = vpop.f32.mrb[17].mxu1 }
 0x7dc   : > { %v2863_v33 = vadd.f32 %v2859_v35, %v2847_v38 }
 0x7dd   : > { %v2864_v43 = vmax.f32 %v2862_v37, 0.0 }
 0x7de   : > { %v2865_v41 = vmax.f32 %v2863_v33, 0.0 }
 0x7e0   : > { %2963 = vmatprep.mubr.f32.mxu0 %v2865_v41 }
 0x7e1   : > { %2964 = vmatmul.mubr.f32.vlgmr.msra.gmra.mrb[18].mxu0 %v2864_v43 }
 0x7e2   : > { %4076 = vmatpush3.bf16.msra.mxu0 %v4075_v42  ;;  %3593 = vmatprep.mubr.msk.f32.mxu0 %vm4230_vm10, %v4228_v32 }
 0x7e3   : > { %4077 = vmatprep.subr.bf16.mxu0 %v4229_v61 }
 0x7e6   : > { %4079 = vmatpush3.bf16.msra.mxu0 %v4078_v44 }
 0x7e7   : > { %4080 = vmatprep.subr.bf16.mxu0 %v4229_v61 }
 0x7ea   : > { %4082 = vmatpush3.bf16.msra.mxu0 %v4081_v47 }
 0x7eb   : > { %4083 = vmatprep.subr.bf16.mxu0 %v4229_v61 }
 0x7ee   : > { %4085 = vmatpush3.bf16.msra.mxu0 %v4084_v6 }
 0x7ef   : > { %4086 = vmatprep.subr.bf16.mxu0 %v4229_v61 }
 0x7f2   : > { %4088 = vmatpush3.bf16.msra.mxu0 %v4087_v51 }
 0x7f3   : > { %4089 = vmatprep.subr.bf16.mxu0 %v4229_v61 }
 0x7f6   : > { %4091 = vmatpush3.bf16.msra.mxu0 %v4090_v54 }
 0x7f7   : > { %4092 = vmatprep.subr.bf16.mxu0 %v4229_v61 }
 0x7fa   : > { %4094 = vmatpush3.bf16.msra.mxu0 %v4093_v58 }
 0x7fb   : > { %4095 = vmatprep.subr.bf16.mxu0 %v4229_v61 }
 0x7fe   : > { %4097 = vmatpush3.bf16.msra.mxu0 %v4096_v62 }
 0x8b4   : > { %v3486_v63 = vpop.f32.mrb[18].mxu0 }
 0x8b5   : > { %v3487_v61 = vpop.f32.mrb[19].mxu0 }
 0x8b6   : > { %v3488_v1 = vadd.f32 %v3487_v61, %v3486_v63 }
 0x8b8   : > { %v2966_v2 = vadd.f32 %v3488_v1, %v2898_v0 }
 0x8ba   : > { %v2969_v3 = vmax.f32 %v2966_v2, 0.0 }
 0x8bc   : > { %3594 = vmatmul.mubr.f32.vlgmr.msra.gmra.mrb[20].mxu0 %v2969_v3 }
 0x98f   : > { %v3053_v32 = vpop.f32.mrb[20].mxu0 }
 0x990   : > { %v3054_v5 = vadd.f32 %v3053_v32, %v2986_v4  ;;  %v3595_v9 = vpop.f32.mrb[21].mxu0 }
 0x992   : > { %3057 = vst [vmem:[%s513_s29] sm:$0x1] %v3054_v5 }
 0x993   : > { %4176 = shalt.err (!%p4173_p3)
}
 0x994   : > { %s4177_s19 = scalar_lea.hbm %s5783_s18, 16  ;;  %s4181_s17 = scalar_lea.hbm %s5841_s16, 32 }
 0x995   : > { %p4178_p4 = scmp.ne.s32.totalorder %s5783_s18, %s4177_s19  ;;  %p4182_p9 = scmp.lt.u32.totalorder %s5783_s18, %s5841_s16 }
 0x996   : > { %p4183_p10 = scmp.lt.u32.totalorder %s4181_s17, %s4177_s19  ;;  %p4185_p12 = scmp.lt.u32.totalorder %s4177_s19, %s5783_s18 }
 0x997   : > { %p4179_p7 = pnand %p4178_p4, %p4355_p5 }
 0x998   : > { %p4184_p11 = por %p4183_p10, %p4182_p9 }
 0x999   : > { %p4180_p8 = pneg %p4179_p7 }
 0x99a   : > { %p4186_p13 = por %p4185_p12, %p4184_p11 }
 0x99c   : > { %p4187_p0 = pnand %p4186_p13, %p4180_p8 }
 0x99e   : > { %4190 = shalt.err (!%p4187_p0)
}
 0x99f   : > { %4120 = dma.vmem_to_hbm [thread:$0]  (%p4355_p5), %s5785_s27, 16, %s5783_s18, %s3059_s23  }
 0x9a0 PF: > { %p4126_p1 = scmp.ge.s32.totalorder %s4225_s24, 2  ;;  %s3083_s20 = sand.u32 1, %s4213_s21  }
 0x9a1   : > { %s3084_s26 = scalar_lea.sflag [#allocation3], %s3083_s20 }
 0x9a2   : > { %p4123_p2 = pnand %p4126_p1, %p4359_p6 }
 0x9a4   : > { %4208 = dma.done.wait (!%p4123_p2), %s3084_s26, 16  }
 0x9a5   : > { %4210 = vsyncadd (!%p4123_p2), %s3084_s26, 4294967280  ;;  %s5861_s24 = sld [smem:[#allocation6_spill]]  ;;  %s5862_s19 = sld [smem:[#allocation5_spill]] }
 0x9a6   : > { %s5863_s23 = sld [smem:[#allocation7_spill]]  ;;  %s5864_s21 = smov %s4217_s22 }
 0x9ab   : > { %p26_p3 = scmp.ge.s32.totalorder %s5861_s24, 4   ;;  %s5865_s22 = smov %s5862_s19 }
 0x9ad   :  { %28 = sbr.rel (!%p26_p3) target bundleno = 6 (0x6), region = 136 }
 0x9b4   :  { %3088 = vsyncpa [#allocation3], 1 }
 0x9b5   :  { %3090 = vsyncpa [#allocation3 + $0x1], 1 }

</bundles_post_ra>
